<compile_context>
chip_gen: v7x
topology: tpu7x:2x2x1
jax: 0.10.0
libtpu: 0.0.40
codegen_flags: <defaults>
</compile_context>

<pallas_src>
import numpy as np
import jax
import jax.numpy as jnp
from jax.experimental import pallas as pl
from jax.experimental.pallas import tpu as pltpu


def _largest_divisor(total, cap):
    """Largest d <= cap with total % d == 0 (only used on *leading* dims)."""
    for d in range(min(total, cap), 0, -1):
        if total % d == 0:
            return d
    return 1


# ---------------------------------------------------------------------------
# Kernel 1: fused 3x3/stride-2 conv (taps rebuilt in-kernel from phase planes)
#           + bias + ReLU + 1x1 classifier + bias.
#   xph block : (1, 4*Hp, C, Wp)  bf16   (4 stride-2 phases of the padded img)
#   output    : (1, NCLS, Ho, Wo) bf16
# ---------------------------------------------------------------------------
def _fused_conv_cls_kernel(xph_ref, wb9_ref, bb_ref, wc_ref, bc_ref, out_ref):
    _, NCLS, Ho, Wo = out_ref.shape
    four_hp, C, Wp = xph_ref.shape[1:]
    Hp = four_hp // 4
    OC = wb9_ref.shape[1]

    xq = xph_ref[0]                                      # (4*Hp, C, Wp) bf16

    # accumulate the 9 taps: feat[r, oc, w] = sum_{c,i,j} w[oc,c,i,j]*xpad[c,2r+i,2w+j]
    feat = jnp.zeros((Ho, OC, Wo), jnp.float32)
    for i in range(3):
        for j in range(3):
            p = (i % 2) * 2 + (j % 2)                    # phase plane index
            r0 = p * Hp + i // 2                         # row start inside stack
            c0 = j // 2                                  # col start (0 or 1)
            tap = xq[r0:r0 + Ho, :, c0:c0 + Wo]          # (Ho, C, Wo) bf16
            w_ij = jnp.broadcast_to(wb9_ref[i * 3 + j],  # (OC, C) -> (Ho, OC, C)
                                    (Ho, OC, C))
            feat = feat + jax.lax.dot_general(
                w_ij, tap, (((2,), (1,)), ((0,), (0,))),
                preferred_element_type=jnp.float32)      # (Ho, OC, Wo) f32

    # bias + ReLU in f32 on the VPU
    feat = jnp.maximum(feat + bb_ref[...][None, :, :], 0.0)

    # 1x1 classifier (bf16 into the MXU, f32 accumulate)
    wc_b = jnp.broadcast_to(wc_ref[...], (Ho, NCLS, OC))
    logits = jax.lax.dot_general(
        wc_b, feat.astype(jnp.bfloat16), (((2,), (1,)), ((0,), (0,))),
        preferred_element_type=jnp.float32)              # (Ho, NCLS, Wo)
    logits = logits + bc_ref[...][None, :, :]

    # store as (NCLS, Ho, Wo) without an in-kernel transpose
    for n in range(NCLS):
        out_ref[0, n] = logits[:, n, :].astype(out_ref.dtype)


def fused_conv_classifier(xph, wb9, bb2, wc2, bc2, N, NCLS, Ho, Wo):
    four_hp, C, Wp = xph.shape[1:]
    OC = wb9.shape[1]
    return pl.pallas_call(
        _fused_conv_cls_kernel,
        out_shape=jax.ShapeDtypeStruct((N, NCLS, Ho, Wo), jnp.bfloat16),
        grid=(N,),
        in_specs=[
            pl.BlockSpec((1, four_hp, C, Wp), lambda n: (n, 0, 0, 0)),
            pl.BlockSpec((9, OC, C), lambda n: (0, 0, 0)),
            pl.BlockSpec((OC, 1), lambda n: (0, 0)),
            pl.BlockSpec((NCLS, OC), lambda n: (0, 0)),
            pl.BlockSpec((NCLS, 1), lambda n: (0, 0)),
        ],
        out_specs=pl.BlockSpec((1, NCLS, Ho, Wo), lambda n: (n, 0, 0, 0)),
        compiler_params=pltpu.CompilerParams(dimension_semantics=("parallel",)),
    )(xph, wb9, bb2, wc2, bc2)


# ---------------------------------------------------------------------------
# Kernel 2: batched bilinear upsample, y[b] = A_h @ x[b] @ A_w^T
#   W pass : one lane-dense 2D matmul over all TB maps
#   H pass : one batched 3D matmul (batch = maps)
# ---------------------------------------------------------------------------
def _bilinear_kernel(x_ref, ah_ref, awt_ref, o_ref):
    TB, Hs, Ws = x_ref.shape
    Hout = ah_ref.shape[0]
    Wout = awt_ref.shape[1]

    x = x_ref[...].astype(jnp.float32)                   # (TB, Hs, Ws)
    t = jnp.dot(x.reshape(TB * Hs, Ws), awt_ref[...],
                preferred_element_type=jnp.float32)      # (TB*Hs, Wout)
    t = t.reshape(TB, Hs, Wout)
    ah_b = jnp.broadcast_to(ah_ref[...], (TB, Hout, Hs))
    y = jax.lax.dot_general(
        ah_b, t, (((2,), (1,)), ((0,), (0,))),
        preferred_element_type=jnp.float32)              # (TB, Hout, Wout)
    o_ref[...] = y.astype(o_ref.dtype)


def bilinear_upsample(x3, A_h, A_w_T, *, vmem_budget_bytes=24 << 20):
    """x3: (B, Hs, Ws) bf16/f32, A_h: (Ho, Hs), A_w_T: (Ws, Wo) -> (B, Ho, Wo) f32."""
    B, Hs, Ws = x3.shape
    Hout = A_h.shape[0]
    Wout = A_w_T.shape[1]
    # maps per step from a VMEM byte budget (double-buffered in + out blocks),
    # capped so the grid keeps >= 2 steps (v7x megacore + DMA/compute overlap).
    per_map = 2 * (Hs * Ws * x3.dtype.itemsize + Hout * Wout * 4)
    cap = max(1, int(vmem_budget_bytes // max(per_map, 1)))
    cap = min(cap, max(1, B // 2))
    TB = _largest_divisor(B, cap)
    return pl.pallas_call(
        _bilinear_kernel,
        out_shape=jax.ShapeDtypeStruct((B, Hout, Wout), jnp.float32),
        grid=(B // TB,),
        in_specs=[
            pl.BlockSpec((TB, Hs, Ws), lambda i: (i, 0, 0)),
            pl.BlockSpec((Hout, Hs), lambda i: (0, 0)),
            pl.BlockSpec((Ws, Wout), lambda i: (0, 0)),
        ],
        out_specs=pl.BlockSpec((TB, Hout, Wout), lambda i: (i, 0, 0)),
        compiler_params=pltpu.CompilerParams(dimension_semantics=("parallel",)),
    )(x3, A_h, A_w_T)


# ---------------------------------------------------------------------------
# Glue (plain JAX / numpy): phase split, interpolation matrices
# ---------------------------------------------------------------------------
def space_to_phases(x, Ho, Wo):
    """(N,C,H,W) -> (N, 4*(Ho+1), C, Wo+1) bf16 stride-2 phase planes of pad-1 x.

    xph[n, p*(Ho+1)+hq, c, wq] == xpad[n, c, 2*hq + p//2, 2*wq + p%2]
    """
    N, C, H, W = x.shape
    Hp, Wp = Ho + 1, Wo + 1
    xpad = jnp.pad(x, ((0, 0), (0, 0),
                       (1, 2 * Hp - H - 1), (1, 2 * Wp - W - 1)))
    xph = xpad.reshape(N, C, Hp, 2, Wp, 2)
    xph = xph.transpose(0, 3, 5, 2, 1, 4)                # (N, 2, 2, Hp, C, Wp)
    xph = xph.reshape(N, 4 * Hp, C, Wp)
    return xph.astype(jnp.bfloat16)


def bilinear_matrix(out_size, in_size):
    """PyTorch F.interpolate(mode='bilinear', align_corners=False) weights."""
    scale = in_size / out_size
    idx = np.arange(out_size)
    src = (idx + 0.5) * scale - 0.5
    src = np.clip(src, 0.0, None)
    i0 = np.minimum(np.floor(src).astype(np.int64), in_size - 1)
    i1 = np.minimum(i0 + 1, in_size - 1)
    w1 = (src - i0).astype(np.float32)
    w0 = (1.0 - w1).astype(np.float32)
    A = np.zeros((out_size, in_size), dtype=np.float32)
    A[idx, i0] += w0
    A[idx, i1] += w1
    return jnp.asarray(A)


# ---------------------------------------------------------------------------
# DeepLab forward
# ---------------------------------------------------------------------------
def deeplab_forward(x, params):
    """x: (N, C_in, H, W) float32 NCHW -> (N, num_classes, H, W)."""
    N, C_in, H, W = x.shape
    wb, bb = params["backbone_w"], params["backbone_b"]   # (OC, C_in, 3, 3), (OC,)
    wc, bc = params["cls_w"], params["cls_b"]             # (NCLS, OC, 1, 1), (NCLS,)
    OC = wb.shape[0]
    NCLS = wc.shape[0]
    Ho = (H + 2 - 3) // 2 + 1
    Wo = (W + 2 - 3) // 2 + 1

    # stride-2 phase split (bf16): the only activation rearrangement in HBM.
    xph = space_to_phases(x, Ho, Wo)                       # (N, 4*(Ho+1), C_in, Wo+1)

    wb9 = jnp.transpose(wb, (2, 3, 0, 1)).reshape(9, OC, C_in).astype(jnp.bfloat16)
    bb2 = bb.reshape(OC, 1).astype(jnp.float32)
    wc2 = wc.reshape(NCLS, OC).astype(jnp.bfloat16)
    bc2 = bc.reshape(NCLS, 1).astype(jnp.float32)

    # fused conv + ReLU + classifier; logits stay bf16 in HBM.
    logits = fused_conv_classifier(xph, wb9, bb2, wc2, bc2, N, NCLS, Ho, Wo)

    # contiguous (free) reshape to a stack of maps for the upsampler.
    logits3 = logits.reshape(N * NCLS, Ho, Wo)
    A_h = bilinear_matrix(H, Ho)                           # (H, Ho)
    A_w_T = bilinear_matrix(W, Wo).T                       # (Wo, W)
    up = bilinear_upsample(logits3, A_h, A_w_T)            # (N*NCLS, H, W) f32
    return up.reshape(N, NCLS, H, W)


# ---------------------------------------------------------------------------
# Pure-JAX reference (f32) for a correctness check
# ---------------------------------------------------------------------------
def reference_forward(x, params):
    wb, bb = params["backbone_w"], params["backbone_b"]
    wc, bc = params["cls_w"], params["cls_b"]
    feat = jax.lax.conv_general_dilated(
        x, wb, window_strides=(2, 2), padding=((1, 1), (1, 1)),
        dimension_numbers=("NCHW", "OIHW", "NCHW"))
    feat = jnp.maximum(feat + bb[None, :, None, None], 0.0)
    logits = jnp.einsum("no,bohw->bnhw", wc[:, :, 0, 0], feat) + bc[None, :, None, None]
    N, _, H, W = x.shape
    Ho, Wo = logits.shape[2:]
    A_h = bilinear_matrix(H, Ho)
    A_w = bilinear_matrix(W, Wo)
    t = jnp.einsum("bnhw,vw->bnhv", logits, A_w)
    return jnp.einsum("uh,bnhv->bnuv", A_h, t)


# ---------------------------------------------------------------------------
# Deterministic parameter init + driver
# ---------------------------------------------------------------------------
def init_params(key, c_in=4, c_mid=8, num_classes=3):
    k1, k2, k3, k4 = jax.random.split(key, 4)
    return {
        "backbone_w": 0.1 * jax.random.normal(k1, (c_mid, c_in, 3, 3), jnp.float32),
        "backbone_b": 0.1 * jax.random.normal(k2, (c_mid,), jnp.float32),
        "cls_w": 0.1 * jax.random.normal(k3, (num_classes, c_mid, 1, 1), jnp.float32),
        "cls_b": 0.1 * jax.random.normal(k4, (num_classes,), jnp.float32),
    }


if __name__ == "__main__":
    key = jax.random.PRNGKey(0)
    kx, kp = jax.random.split(key)
    x = jax.random.normal(kx, (2, 4, 16, 16), jnp.float32)   # NCHW, like PyTorch
    params = init_params(kp)

    fwd = jax.jit(deeplab_forward)
    out = jax.block_until_ready(fwd(x, params))
    assert out.shape == (2, 3, 16, 16), out.shape
    assert bool(jnp.all(jnp.isfinite(out)))

    # bf16 MXU path => loose tolerance vs. the f32 reference
    ref = reference_forward(x, params)
    err = float(jnp.max(jnp.abs(out - ref)))
    assert err < 5e-2, f"max abs err {err}"
    print("KERNEL_OK")
</pallas_src>

<mosaic_0001>
module attributes {stable_mosaic.version = 11 : i64} {
  func.func @_fused_conv_cls_kernel(%arg0: i32, %arg1: memref<1x36x4x9xbf16, #tpu.memory_space<vmem>>, %arg2: memref<9x8x4xbf16, #tpu.memory_space<vmem>>, %arg3: memref<8x1xf32, #tpu.memory_space<vmem>>, %arg4: memref<3x8xbf16, #tpu.memory_space<vmem>>, %arg5: memref<3x1xf32, #tpu.memory_space<vmem>>, %arg6: memref<1x3x8x8xbf16, #tpu.memory_space<vmem>>) attributes {dimension_semantics = [#tpu.dimension_semantics<parallel>], iteration_bounds = array<i64: 2>, scalar_prefetch = 0 : i64, scratch_operands = 0 : i64, tpu.core_type = #tpu.core_type<tc>, window_params = [{transform_indices = @transform_0, window_bounds = array<i64: 1, 36, 4, 9>}, {pipeline_mode = #tpu.pipeline_mode<synchronous>, transform_indices = @transform_1, window_bounds = array<i64: 9, 8, 4>}, {pipeline_mode = #tpu.pipeline_mode<synchronous>, transform_indices = @transform_2, window_bounds = array<i64: 8, 1>}, {pipeline_mode = #tpu.pipeline_mode<synchronous>, transform_indices = @transform_3, window_bounds = array<i64: 3, 8>}, {pipeline_mode = #tpu.pipeline_mode<synchronous>, transform_indices = @transform_4, window_bounds = array<i64: 3, 1>}, {transform_indices = @transform_5, window_bounds = array<i64: 1, 3, 8, 8>}]} {
    %c0 = arith.constant 0 : index
    %c0_0 = arith.constant 0 : index
    %c0_1 = arith.constant 0 : index
    %c0_2 = arith.constant 0 : index
    %0 = vector.load %arg1[%c0, %c0_0, %c0_1, %c0_2] : memref<1x36x4x9xbf16, #tpu.memory_space<vmem>>, vector<1x36x4x9xbf16>
    %1 = vector.shape_cast %0 : vector<1x36x4x9xbf16> to vector<36x4x9xbf16>
    %cst = arith.constant 0.000000e+00 : f32
    %2 = vector.broadcast %cst : f32 to vector<8x8x8xf32>
    %3 = vector.extract_strided_slice %1 {offsets = [0, 0, 0], sizes = [8, 4, 8], strides = [1, 1, 1]} : vector<36x4x9xbf16> to vector<8x4x8xbf16>
    %c0_3 = arith.constant 0 : index
    %c0_4 = arith.constant 0 : index
    %c0_5 = arith.constant 0 : index
    %4 = vector.load %arg2[%c0_3, %c0_4, %c0_5] : memref<9x8x4xbf16, #tpu.memory_space<vmem>>, vector<1x8x4xbf16>
    %5 = vector.shape_cast %4 : vector<1x8x4xbf16> to vector<8x4xbf16>
    %6 = vector.shape_cast %5 : vector<8x4xbf16> to vector<1x8x4xbf16>
    %7 = vector.broadcast %6 : vector<1x8x4xbf16> to vector<8x8x4xbf16>
    %cst_6 = arith.constant dense<0.000000e+00> : vector<8x8x8xf32>
    %8 = tpu.matmul %7, %3, %cst_6 {dimension_numbers = #tpu.dot_dimension_numbers<[2], [1], [1], [2], [0, 0, 0, 1, 1, 2], [0], [0]>} : vector<8x8x4xbf16>, vector<8x4x8xbf16>, vector<8x8x8xf32> -> vector<8x8x8xf32>
    %9 = arith.addf %2, %8 : vector<8x8x8xf32>
    %10 = vector.extract_strided_slice %1 {offsets = [9, 0, 0], sizes = [8, 4, 8], strides = [1, 1, 1]} : vector<36x4x9xbf16> to vector<8x4x8xbf16>
    %c1 = arith.constant 1 : index
    %c0_7 = arith.constant 0 : index
    %c0_8 = arith.constant 0 : index
    %11 = vector.load %arg2[%c1, %c0_7, %c0_8] : memref<9x8x4xbf16, #tpu.memory_space<vmem>>, vector<1x8x4xbf16>
    %12 = vector.shape_cast %11 : vector<1x8x4xbf16> to vector<8x4xbf16>
    %13 = vector.shape_cast %12 : vector<8x4xbf16> to vector<1x8x4xbf16>
    %14 = vector.broadcast %13 : vector<1x8x4xbf16> to vector<8x8x4xbf16>
    %cst_9 = arith.constant dense<0.000000e+00> : vector<8x8x8xf32>
    %15 = tpu.matmul %14, %10, %cst_9 {dimension_numbers = #tpu.dot_dimension_numbers<[2], [1], [1], [2], [0, 0, 0, 1, 1, 2], [0], [0]>} : vector<8x8x4xbf16>, vector<8x4x8xbf16>, vector<8x8x8xf32> -> vector<8x8x8xf32>
    %16 = arith.addf %9, %15 : vector<8x8x8xf32>
    %17 = vector.extract_strided_slice %1 {offsets = [0, 0, 1], sizes = [8, 4, 8], strides = [1, 1, 1]} : vector<36x4x9xbf16> to vector<8x4x8xbf16>
    %c2 = arith.constant 2 : index
    %c0_10 = arith.constant 0 : index
    %c0_11 = arith.constant 0 : index
    %18 = vector.load %arg2[%c2, %c0_10, %c0_11] : memref<9x8x4xbf16, #tpu.memory_space<vmem>>, vector<1x8x4xbf16>
    %19 = vector.shape_cast %18 : vector<1x8x4xbf16> to vector<8x4xbf16>
    %20 = vector.shape_cast %19 : vector<8x4xbf16> to vector<1x8x4xbf16>
    %21 = vector.broadcast %20 : vector<1x8x4xbf16> to vector<8x8x4xbf16>
    %cst_12 = arith.constant dense<0.000000e+00> : vector<8x8x8xf32>
    %22 = tpu.matmul %21, %17, %cst_12 {dimension_numbers = #tpu.dot_dimension_numbers<[2], [1], [1], [2], [0, 0, 0, 1, 1, 2], [0], [0]>} : vector<8x8x4xbf16>, vector<8x4x8xbf16>, vector<8x8x8xf32> -> vector<8x8x8xf32>
    %23 = arith.addf %16, %22 : vector<8x8x8xf32>
    %24 = vector.extract_strided_slice %1 {offsets = [18, 0, 0], sizes = [8, 4, 8], strides = [1, 1, 1]} : vector<36x4x9xbf16> to vector<8x4x8xbf16>
    %c3 = arith.constant 3 : index
    %c0_13 = arith.constant 0 : index
    %c0_14 = arith.constant 0 : index
    %25 = vector.load %arg2[%c3, %c0_13, %c0_14] : memref<9x8x4xbf16, #tpu.memory_space<vmem>>, vector<1x8x4xbf16>
    %26 = vector.shape_cast %25 : vector<1x8x4xbf16> to vector<8x4xbf16>
    %27 = vector.shape_cast %26 : vector<8x4xbf16> to vector<1x8x4xbf16>
    %28 = vector.broadcast %27 : vector<1x8x4xbf16> to vector<8x8x4xbf16>
    %cst_15 = arith.constant dense<0.000000e+00> : vector<8x8x8xf32>
    %29 = tpu.matmul %28, %24, %cst_15 {dimension_numbers = #tpu.dot_dimension_numbers<[2], [1], [1], [2], [0, 0, 0, 1, 1, 2], [0], [0]>} : vector<8x8x4xbf16>, vector<8x4x8xbf16>, vector<8x8x8xf32> -> vector<8x8x8xf32>
    %30 = arith.addf %23, %29 : vector<8x8x8xf32>
    %31 = vector.extract_strided_slice %1 {offsets = [27, 0, 0], sizes = [8, 4, 8], strides = [1, 1, 1]} : vector<36x4x9xbf16> to vector<8x4x8xbf16>
    %c4 = arith.constant 4 : index
    %c0_16 = arith.constant 0 : index
    %c0_17 = arith.constant 0 : index
    %32 = vector.load %arg2[%c4, %c0_16, %c0_17] : memref<9x8x4xbf16, #tpu.memory_space<vmem>>, vector<1x8x4xbf16>
    %33 = vector.shape_cast %32 : vector<1x8x4xbf16> to vector<8x4xbf16>
    %34 = vector.shape_cast %33 : vector<8x4xbf16> to vector<1x8x4xbf16>
    %35 = vector.broadcast %34 : vector<1x8x4xbf16> to vector<8x8x4xbf16>
    %cst_18 = arith.constant dense<0.000000e+00> : vector<8x8x8xf32>
    %36 = tpu.matmul %35, %31, %cst_18 {dimension_numbers = #tpu.dot_dimension_numbers<[2], [1], [1], [2], [0, 0, 0, 1, 1, 2], [0], [0]>} : vector<8x8x4xbf16>, vector<8x4x8xbf16>, vector<8x8x8xf32> -> vector<8x8x8xf32>
    %37 = arith.addf %30, %36 : vector<8x8x8xf32>
    %38 = vector.extract_strided_slice %1 {offsets = [18, 0, 1], sizes = [8, 4, 8], strides = [1, 1, 1]} : vector<36x4x9xbf16> to vector<8x4x8xbf16>
    %c5 = arith.constant 5 : index
    %c0_19 = arith.constant 0 : index
    %c0_20 = arith.constant 0 : index
    %39 = vector.load %arg2[%c5, %c0_19, %c0_20] : memref<9x8x4xbf16, #tpu.memory_space<vmem>>, vector<1x8x4xbf16>
    %40 = vector.shape_cast %39 : vector<1x8x4xbf16> to vector<8x4xbf16>
    %41 = vector.shape_cast %40 : vector<8x4xbf16> to vector<1x8x4xbf16>
    %42 = vector.broadcast %41 : vector<1x8x4xbf16> to vector<8x8x4xbf16>
    %cst_21 = arith.constant dense<0.000000e+00> : vector<8x8x8xf32>
    %43 = tpu.matmul %42, %38, %cst_21 {dimension_numbers = #tpu.dot_dimension_numbers<[2], [1], [1], [2], [0, 0, 0, 1, 1, 2], [0], [0]>} : vector<8x8x4xbf16>, vector<8x4x8xbf16>, vector<8x8x8xf32> -> vector<8x8x8xf32>
    %44 = arith.addf %37, %43 : vector<8x8x8xf32>
    %45 = vector.extract_strided_slice %1 {offsets = [1, 0, 0], sizes = [8, 4, 8], strides = [1, 1, 1]} : vector<36x4x9xbf16> to vector<8x4x8xbf16>
    %c6 = arith.constant 6 : index
    %c0_22 = arith.constant 0 : index
    %c0_23 = arith.constant 0 : index
    %46 = vector.load %arg2[%c6, %c0_22, %c0_23] : memref<9x8x4xbf16, #tpu.memory_space<vmem>>, vector<1x8x4xbf16>
    %47 = vector.shape_cast %46 : vector<1x8x4xbf16> to vector<8x4xbf16>
    %48 = vector.shape_cast %47 : vector<8x4xbf16> to vector<1x8x4xbf16>
    %49 = vector.broadcast %48 : vector<1x8x4xbf16> to vector<8x8x4xbf16>
    %cst_24 = arith.constant dense<0.000000e+00> : vector<8x8x8xf32>
    %50 = tpu.matmul %49, %45, %cst_24 {dimension_numbers = #tpu.dot_dimension_numbers<[2], [1], [1], [2], [0, 0, 0, 1, 1, 2], [0], [0]>} : vector<8x8x4xbf16>, vector<8x4x8xbf16>, vector<8x8x8xf32> -> vector<8x8x8xf32>
    %51 = arith.addf %44, %50 : vector<8x8x8xf32>
    %52 = vector.extract_strided_slice %1 {offsets = [10, 0, 0], sizes = [8, 4, 8], strides = [1, 1, 1]} : vector<36x4x9xbf16> to vector<8x4x8xbf16>
    %c7 = arith.constant 7 : index
    %c0_25 = arith.constant 0 : index
    %c0_26 = arith.constant 0 : index
    %53 = vector.load %arg2[%c7, %c0_25, %c0_26] : memref<9x8x4xbf16, #tpu.memory_space<vmem>>, vector<1x8x4xbf16>
    %54 = vector.shape_cast %53 : vector<1x8x4xbf16> to vector<8x4xbf16>
    %55 = vector.shape_cast %54 : vector<8x4xbf16> to vector<1x8x4xbf16>
    %56 = vector.broadcast %55 : vector<1x8x4xbf16> to vector<8x8x4xbf16>
    %cst_27 = arith.constant dense<0.000000e+00> : vector<8x8x8xf32>
    %57 = tpu.matmul %56, %52, %cst_27 {dimension_numbers = #tpu.dot_dimension_numbers<[2], [1], [1], [2], [0, 0, 0, 1, 1, 2], [0], [0]>} : vector<8x8x4xbf16>, vector<8x4x8xbf16>, vector<8x8x8xf32> -> vector<8x8x8xf32>
    %58 = arith.addf %51, %57 : vector<8x8x8xf32>
    %59 = vector.extract_strided_slice %1 {offsets = [1, 0, 1], sizes = [8, 4, 8], strides = [1, 1, 1]} : vector<36x4x9xbf16> to vector<8x4x8xbf16>
    %c8 = arith.constant 8 : index
    %c0_28 = arith.constant 0 : index
    %c0_29 = arith.constant 0 : index
    %60 = vector.load %arg2[%c8, %c0_28, %c0_29] : memref<9x8x4xbf16, #tpu.memory_space<vmem>>, vector<1x8x4xbf16>
    %61 = vector.shape_cast %60 : vector<1x8x4xbf16> to vector<8x4xbf16>
    %62 = vector.shape_cast %61 : vector<8x4xbf16> to vector<1x8x4xbf16>
    %63 = vector.broadcast %62 : vector<1x8x4xbf16> to vector<8x8x4xbf16>
    %cst_30 = arith.constant dense<0.000000e+00> : vector<8x8x8xf32>
    %64 = tpu.matmul %63, %59, %cst_30 {dimension_numbers = #tpu.dot_dimension_numbers<[2], [1], [1], [2], [0, 0, 0, 1, 1, 2], [0], [0]>} : vector<8x8x4xbf16>, vector<8x4x8xbf16>, vector<8x8x8xf32> -> vector<8x8x8xf32>
    %65 = arith.addf %58, %64 : vector<8x8x8xf32>
    %c0_31 = arith.constant 0 : index
    %c0_32 = arith.constant 0 : index
    %66 = vector.load %arg3[%c0_31, %c0_32] : memref<8x1xf32, #tpu.memory_space<vmem>>, vector<8x1xf32>
    %67 = vector.shape_cast %66 : vector<8x1xf32> to vector<1x8x1xf32>
    %68 = vector.broadcast %67 : vector<1x8x1xf32> to vector<8x8x8xf32>
    %69 = arith.addf %65, %68 : vector<8x8x8xf32>
    %cst_33 = arith.constant 0.000000e+00 : f32
    %70 = vector.broadcast %cst_33 : f32 to vector<8x8x8xf32>
    %71 = arith.maximumf %69, %70 : vector<8x8x8xf32>
    %c0_34 = arith.constant 0 : index
    %c0_35 = arith.constant 0 : index
    %72 = vector.load %arg4[%c0_34, %c0_35] : memref<3x8xbf16, #tpu.memory_space<vmem>>, vector<3x8xbf16>
    %73 = vector.shape_cast %72 : vector<3x8xbf16> to vector<1x3x8xbf16>
    %74 = vector.broadcast %73 : vector<1x3x8xbf16> to vector<8x3x8xbf16>
    %75 = arith.truncf %71 : vector<8x8x8xf32> to vector<8x8x8xbf16>
    %cst_36 = arith.constant dense<0.000000e+00> : vector<8x3x8xf32>
    %76 = tpu.matmul %74, %75, %cst_36 {dimension_numbers = #tpu.dot_dimension_numbers<[2], [1], [1], [2], [0, 0, 0, 1, 1, 2], [0], [0]>} : vector<8x3x8xbf16>, vector<8x8x8xbf16>, vector<8x3x8xf32> -> vector<8x3x8xf32>
    %c0_37 = arith.constant 0 : index
    %c0_38 = arith.constant 0 : index
    %77 = vector.load %arg5[%c0_37, %c0_38] : memref<3x1xf32, #tpu.memory_space<vmem>>, vector<3x1xf32>
    %78 = vector.shape_cast %77 : vector<3x1xf32> to vector<1x3x1xf32>
    %79 = vector.broadcast %78 : vector<1x3x1xf32> to vector<8x3x8xf32>
    %80 = arith.addf %76, %79 : vector<8x3x8xf32>
    %81 = vector.extract_strided_slice %80 {offsets = [0, 0, 0], sizes = [8, 1, 8], strides = [1, 1, 1]} : vector<8x3x8xf32> to vector<8x1x8xf32>
    %82 = vector.shape_cast %81 : vector<8x1x8xf32> to vector<8x8xf32>
    %83 = arith.truncf %82 : vector<8x8xf32> to vector<8x8xbf16>
    %c0_39 = arith.constant 0 : index
    %c0_40 = arith.constant 0 : index
    %c0_41 = arith.constant 0 : index
    %c0_42 = arith.constant 0 : index
    %84 = vector.load %arg6[%c0_39, %c0_40, %c0_41, %c0_42] : memref<1x3x8x8xbf16, #tpu.memory_space<vmem>>, vector<1x1x8x8xbf16>
    %85 = vector.shape_cast %84 : vector<1x1x8x8xbf16> to vector<8x8xbf16>
    %86 = vector.shape_cast %83 : vector<8x8xbf16> to vector<1x1x8x8xbf16>
    tpu.vector_store %arg6[%c0_39, %c0_40, %c0_41, %c0_42], %86 {strides = array<i32>} : memref<1x3x8x8xbf16, #tpu.memory_space<vmem>>, vector<1x1x8x8xbf16>,
    %87 = vector.extract_strided_slice %80 {offsets = [0, 1, 0], sizes = [8, 1, 8], strides = [1, 1, 1]} : vector<8x3x8xf32> to vector<8x1x8xf32>
    %88 = vector.shape_cast %87 : vector<8x1x8xf32> to vector<8x8xf32>
    %89 = arith.truncf %88 : vector<8x8xf32> to vector<8x8xbf16>
    %c0_43 = arith.constant 0 : index
    %c1_44 = arith.constant 1 : index
    %c0_45 = arith.constant 0 : index
    %c0_46 = arith.constant 0 : index
    %90 = vector.load %arg6[%c0_43, %c1_44, %c0_45, %c0_46] : memref<1x3x8x8xbf16, #tpu.memory_space<vmem>>, vector<1x1x8x8xbf16>
    %91 = vector.shape_cast %90 : vector<1x1x8x8xbf16> to vector<8x8xbf16>
    %92 = vector.shape_cast %89 : vector<8x8xbf16> to vector<1x1x8x8xbf16>
    tpu.vector_store %arg6[%c0_43, %c1_44, %c0_45, %c0_46], %92 {strides = array<i32>} : memref<1x3x8x8xbf16, #tpu.memory_space<vmem>>, vector<1x1x8x8xbf16>,
    %93 = vector.extract_strided_slice %80 {offsets = [0, 2, 0], sizes = [8, 1, 8], strides = [1, 1, 1]} : vector<8x3x8xf32> to vector<8x1x8xf32>
    %94 = vector.shape_cast %93 : vector<8x1x8xf32> to vector<8x8xf32>
    %95 = arith.truncf %94 : vector<8x8xf32> to vector<8x8xbf16>
    %c0_47 = arith.constant 0 : index
    %c2_48 = arith.constant 2 : index
    %c0_49 = arith.constant 0 : index
    %c0_50 = arith.constant 0 : index
    %96 = vector.load %arg6[%c0_47, %c2_48, %c0_49, %c0_50] : memref<1x3x8x8xbf16, #tpu.memory_space<vmem>>, vector<1x1x8x8xbf16>
    %97 = vector.shape_cast %96 : vector<1x1x8x8xbf16> to vector<8x8xbf16>
    %98 = vector.shape_cast %95 : vector<8x8xbf16> to vector<1x1x8x8xbf16>
    tpu.vector_store %arg6[%c0_47, %c2_48, %c0_49, %c0_50], %98 {strides = array<i32>} : memref<1x3x8x8xbf16, #tpu.memory_space<vmem>>, vector<1x1x8x8xbf16>,
    return
  }
  func.func @transform_0(%arg0: i32) -> (i32, i32, i32, i32) {
    %c0_i32 = arith.constant 0 : i32
    %c0_i32_0 = arith.constant 0 : i32
    %c0_i32_1 = arith.constant 0 : i32
    %c0_i32_2 = arith.constant 0 : i32
    return %arg0, %c0_i32, %c0_i32_0, %c0_i32_1 : i32, i32, i32, i32
  }
  func.func @transform_1(%arg0: i32) -> (i32, i32, i32) {
    %c0_i32 = arith.constant 0 : i32
    %c0_i32_0 = arith.constant 0 : i32
    %c0_i32_1 = arith.constant 0 : i32
    %c0_i32_2 = arith.constant 0 : i32
    return %c0_i32, %c0_i32_0, %c0_i32_1 : i32, i32, i32
  }
  func.func @transform_2(%arg0: i32) -> (i32, i32) {
    %c0_i32 = arith.constant 0 : i32
    %c0_i32_0 = arith.constant 0 : i32
    %c0_i32_1 = arith.constant 0 : i32
    return %c0_i32, %c0_i32_0 : i32, i32
  }
  func.func @transform_3(%arg0: i32) -> (i32, i32) {
    %c0_i32 = arith.constant 0 : i32
    %c0_i32_0 = arith.constant 0 : i32
    %c0_i32_1 = arith.constant 0 : i32
    return %c0_i32, %c0_i32_0 : i32, i32
  }
  func.func @transform_4(%arg0: i32) -> (i32, i32) {
    %c0_i32 = arith.constant 0 : i32
    %c0_i32_0 = arith.constant 0 : i32
    %c0_i32_1 = arith.constant 0 : i32
    return %c0_i32, %c0_i32_0 : i32, i32
  }
  func.func @transform_5(%arg0: i32) -> (i32, i32, i32, i32) {
    %c0_i32 = arith.constant 0 : i32
    %c0_i32_0 = arith.constant 0 : i32
    %c0_i32_1 = arith.constant 0 : i32
    %c0_i32_2 = arith.constant 0 : i32
    return %arg0, %c0_i32, %c0_i32_0, %c0_i32_1 : i32, i32, i32, i32
  }
}

module attributes {stable_mosaic.version = 11 : i64} {
  func.func @_bilinear_kernel(%arg0: i32, %arg1: memref<3x8x8xbf16, #tpu.memory_space<vmem>>, %arg2: memref<16x8xf32, #tpu.memory_space<vmem>>, %arg3: memref<8x16xf32, #tpu.memory_space<vmem>>, %arg4: memref<3x16x16xf32, #tpu.memory_space<vmem>>) attributes {dimension_semantics = [#tpu.dimension_semantics<parallel>], iteration_bounds = array<i64: 2>, scalar_prefetch = 0 : i64, scratch_operands = 0 : i64, tpu.core_type = #tpu.core_type<tc>, window_params = [{transform_indices = @transform_0, window_bounds = array<i64: 3, 8, 8>}, {pipeline_mode = #tpu.pipeline_mode<synchronous>, transform_indices = @transform_1, window_bounds = array<i64: 16, 8>}, {pipeline_mode = #tpu.pipeline_mode<synchronous>, transform_indices = @transform_2, window_bounds = array<i64: 8, 16>}, {transform_indices = @transform_3, window_bounds = array<i64: 3, 16, 16>}]} {
    %c0 = arith.constant 0 : index
    %c0_0 = arith.constant 0 : index
    %c0_1 = arith.constant 0 : index
    %0 = vector.load %arg1[%c0, %c0_0, %c0_1] : memref<3x8x8xbf16, #tpu.memory_space<vmem>>, vector<3x8x8xbf16>
    %1 = arith.extf %0 : vector<3x8x8xbf16> to vector<3x8x8xf32>
    %2 = vector.shape_cast %1 : vector<3x8x8xf32> to vector<24x8xf32>
    %c0_2 = arith.constant 0 : index
    %c0_3 = arith.constant 0 : index
    %3 = vector.load %arg3[%c0_2, %c0_3] : memref<8x16xf32, #tpu.memory_space<vmem>>, vector<8x16xf32>
    %cst = arith.constant dense<0.000000e+00> : vector<24x16xf32>
    %4 = tpu.matmul %2, %3, %cst {dimension_numbers = #tpu.dot_dimension_numbers<[1], [0], [0], [1], [0, 0, 1, 1], [], []>} : vector<24x8xf32>, vector<8x16xf32>, vector<24x16xf32> -> vector<24x16xf32>
    %5 = vector.shape_cast %4 : vector<24x16xf32> to vector<3x8x16xf32>
    %c0_4 = arith.constant 0 : index
    %c0_5 = arith.constant 0 : index
    %6 = vector.load %arg2[%c0_4, %c0_5] : memref<16x8xf32, #tpu.memory_space<vmem>>, vector<16x8xf32>
    %7 = vector.shape_cast %6 : vector<16x8xf32> to vector<1x16x8xf32>
    %8 = vector.broadcast %7 : vector<1x16x8xf32> to vector<3x16x8xf32>
    %cst_6 = arith.constant dense<0.000000e+00> : vector<3x16x16xf32>
    %9 = tpu.matmul %8, %5, %cst_6 {dimension_numbers = #tpu.dot_dimension_numbers<[2], [1], [1], [2], [0, 0, 0, 1, 1, 2], [0], [0]>} : vector<3x16x8xf32>, vector<3x8x16xf32>, vector<3x16x16xf32> -> vector<3x16x16xf32>
    %c0_7 = arith.constant 0 : index
    %c0_8 = arith.constant 0 : index
    %c0_9 = arith.constant 0 : index
    %10 = vector.load %arg4[%c0_7, %c0_8, %c0_9] : memref<3x16x16xf32, #tpu.memory_space<vmem>>, vector<3x16x16xf32>
    tpu.vector_store %arg4[%c0_7, %c0_8, %c0_9], %9 {strides = array<i32>} : memref<3x16x16xf32, #tpu.memory_space<vmem>>, vector<3x16x16xf32>,
    return
  }
  func.func @transform_0(%arg0: i32) -> (i32, i32, i32) {
    %c0_i32 = arith.constant 0 : i32
    %c0_i32_0 = arith.constant 0 : i32
    %c0_i32_1 = arith.constant 0 : i32
    return %arg0, %c0_i32, %c0_i32_0 : i32, i32, i32
  }
  func.func @transform_1(%arg0: i32) -> (i32, i32) {
    %c0_i32 = arith.constant 0 : i32
    %c0_i32_0 = arith.constant 0 : i32
    %c0_i32_1 = arith.constant 0 : i32
    return %c0_i32, %c0_i32_0 : i32, i32
  }
  func.func @transform_2(%arg0: i32) -> (i32, i32) {
    %c0_i32 = arith.constant 0 : i32
    %c0_i32_0 = arith.constant 0 : i32
    %c0_i32_1 = arith.constant 0 : i32
    return %c0_i32, %c0_i32_0 : i32, i32
  }
  func.func @transform_3(%arg0: i32) -> (i32, i32, i32) {
    %c0_i32 = arith.constant 0 : i32
    %c0_i32_0 = arith.constant 0 : i32
    %c0_i32_1 = arith.constant 0 : i32
    return %arg0, %c0_i32, %c0_i32_0 : i32, i32, i32
  }
}

</mosaic_0001>

<bundles_post_ra>
// kernel: deeplab_forward.3
= control target key start
LH: loop header
LB: loop body
LE: loop exit
PB: predicated region body
PF: predicated region fallthrough
CT: control target
= control target key end

     0   :  { %8 = vsyncpa [#allocation3], 0  ;;  %s912_s0 = inlined_call_operand.vmem [shape: bf16[6,8,8], index: 0, kind: input, shape index: {}]   ;;  %s913_s1 = inlined_call_operand.vmem [shape: f32[16,8], index: 1, kind: input, shape index: {}]   ;;  %s914_s2 = inlined_call_operand.vmem [shape: f32[8,16], index: 2, kind: input, shape index: {}]   ;;  %s915_s3 = inlined_call_operand.hbm [shape: f32[6,16,16], index: 3, kind: output, shape index: {}]  }
   0x1   :  { %10 = vsyncpa [#allocation3 + $0x1], 0  ;;  %s783_s12 = smov 0   ;;  %s785_s13 = smov 0  }
   0x2   :  { %s787_s14 = smov 0   ;;  %s789_s15 = smov 0  }
   0x3 LB: > { %s804_s16 = sadd.s32 4294967295, %s756_s15   ;;  %s586_s17 = sadd.s32 4294967294, %s756_s15   ;;  %s756_s15 = sphi %s789_s15, %s921_s15   ;;  %s752_s14 = sphi %s787_s14, %s920_s14   ;;  %s748_s13 = sphi %s785_s13, %s919_s13   ;;  %s744_s12 = sphi %s783_s12, %s918_s12  }
   0x4   : > { %s808_s18 = sadd.s32 1, %s756_s15   ;;  %s91_s19 = sadd.s32 1, %s752_s14 }
   0x5   : > { %s88_s20 = ssub.s32 %s756_s15, %s808_s18  ;;  %p101_p0 = scmp.ne.s32.totalorder %s752_s14, %s748_s13 }
   0x6   : > { %p89_p1 = scmp.eq.s32.totalorder %s88_s20, 0  ;;  %p102_p2 = scmp.eq.s32.totalorder %s804_s16, 1 }
   0x7   : > { %p107_p3 = scmp.ne.s32.totalorder %s748_s13, %s744_s12  ;;  %p108_p4 = scmp.eq.s32.totalorder %s586_s17, 1 }
   0x8   : > { %s819_s21 = scalar_select %p89_p1, %s752_s14, %s91_s19  }
   0x9   : > { %p821_p5 = por %p102_p2, %p101_p0  ;;  %p825_p6 = por %p108_p4, %p107_p3 }
   0xa   : > { %p589_p7 = scmp.ge.s32.totalorder %s756_s15, 1  ;;  %p141_p8 = scmp.lt.s32.totalorder %s756_s15, 3 }
   0xc   : > { %p142_p9 = pnand %p589_p7, %p141_p8 }
   0xd   : > { %v178_v0 = vld [vmem:[%s914_s2] sm:$0xff] (!%p142_p9)  ;;  %s165_s26 = smul.u32 (!%p142_p9), 3, %s804_s16  ;;  %v758_v1 = vmov (!%p142_p9), 0.0   ;;  %vm759_vm0 = vmmov (!%p142_p9), 0   ;;  %vm179_vm1 = vcmask (!%p142_p9), 64512   ;;  %v270_v9 = vld [vmem:[%s913_s1 + $0x8] sm:$0xff] (!%p142_p9) }
   0xe   : > { %145 = sbr.rel (%p142_p9) target bundleno = 477 (0x1dd), region = 32  ;;  %624 = vmatprep.subr.mxu0 (!%p142_p9), %v758_v1  ;;  %626 = vmatprep.mubr.msk.f32.mxu0 (!%p142_p9), %vm759_vm0, %v758_v1  ;;  %v269_v7 = vld [vmem:[%s913_s1] sm:$0xff] (!%p142_p9)  ;;  %s162_s8 = sand.u32 (!%p142_p9), 1, %s748_s13   ;;  %vm502_vm2 = vcmask (!%p142_p9), 130048  }
   0xf   : > { %625 = vmatpush3.msra.mxu0 (!%p142_p9), %v178_v0  ;;  %p166_p10 = scmp.lt.s32.totalorder (!%p142_p9), %s165_s26, 5  ;;  %637 = vmatprep.mubr.msk.f32.mxu1 (!%p142_p9), %vm179_vm1, %v269_v7  ;;  %s650_s9 = smul.u32 (!%p142_p9), 48, %s162_s8 }
  0x10   : > { %s610_s11 = smul.u32 (!%p142_p9), 768, %s804_s16  ;;  %s871_s16 = scalar_lea.sflag (!%p142_p9), [#allocation3], %s162_s8 }
  0x11   : > { %s164_s10 = scalar_lea.vmem (!%p142_p9), [#allocation2], %s650_s9 }
  0x12   : > { %s524_s17 = sshll.u32 (!%p142_p9), %s164_s10, 4  ;;  %s867_s24 = scalar_lea.hbm (!%p142_p9), %s915_s3, %s610_s11  ;;  %s862_s17 = int_to_ptr.vmem [resolvable:$true] %s524_s17 }
  0x13   : > { %s694_s25 = scalar_lea.vmem (!%p142_p9), %s862_s17, 768 }
  0x14   : > { %p695_p11 = scmp.ne.s32.totalorder (!%p142_p9), %s862_s17, %s694_s25 }
  0x15   : > { %s923_s26 = smov (!%p166_p10, %s165_s26), 5 }
  0x16   : > { %s590_s27 = sshll.u32 %s923_s26, 2  ;;  %p696_p12 = pnand %p695_p11, %p821_p5 }
  0x17   : > { %s169_s30 = scalar_lea.vmem %s912_s0, %s590_s27  ;;  %s760_s26 = smov [#allocation2]  }
  0x18   : > { %v607_v2 = vld [vmem:[%s169_s30] sm:$0xff]   ;;  %v174_v5 = vld [vmem:[%s169_s30 + $0x8] sm:$0xf]  ;;  %p697_p13 = pneg %p696_p12  ;;  %s698_s27 = sshll.u32 %s760_s26, 4  ;;  %s699_s27 = int_to_ptr.vmem [resolvable:$false] %s698_s27 }
  0x19   : > { %v608_v3 = vunpack.c.l.bf16 %v607_v2  ;;  %v609_v4 = vunpack.c.h.bf16 %v607_v2  ;;  %v177_v6 = vunpack.c.l.bf16 %v174_v5  ;;  %s700_s28 = scalar_lea.vmem %s699_s27, 1536  ;;  %p701_p0 = scmp.lt.s32.totalorder %s862_s17, %s699_s27 }
  0x1a   : > { %p702_p1 = scmp.lt.s32.totalorder %s700_s28, %s694_s25 }
  0x1b   : > { %627 = vmatmul.mubr.msk.f32.vlgmr.msra.gmra.mrb[0].mxu0 %vm179_vm1, %v608_v3 }
  0x1c   : > { %629 = vmatprep.mubr.msk.f32.mxu0 %vm759_vm0, %v758_v1  ;;  %p703_p2 = por %p702_p1, %p701_p0 }
  0x1e   : > { %p704_p3 = pnand %p703_p2, %p697_p13 }
  0x1f   : > { %630 = vmatmul.mubr.msk.f32.gmra.mrb[2].mxu0 %vm179_vm1, %v609_v4 }
  0x20   : > { %632 = vmatprep.mubr.msk.f32.mxu0 %vm759_vm0, %v758_v1 }
  0x23   : > { %633 = vmatmul.mubr.msk.f32.gmra.mrb[4].mxu0 %vm179_vm1, %v177_v6 }
  0xee   : > { %v255_v8 = vpop.f32.mrb[0].mxu0 }
  0xef   : > { %v628_v10 = vpop.f32.mrb[1].mxu0  ;;  %635 = vmatprep.subr.mxu1 %v255_v8 }
  0xf0   : > { %636 = vmatpush3.msra.mxu1 %v255_v8 }
  0xf1   : > { %638 = vmatmul.mubr.msk.f32.vlgmr.msra.gmra.mrb[0].mxu1 %vm179_vm1, %v270_v9 }
  0xf2   : > { %v260_v11 = vpop.f32.mrb[2].mxu0  ;;  %642 = vmatprep.mubr.msk.f32.mxu1 %vm179_vm1, %v269_v7 }
  0xf3   : > { %v631_v12 = vpop.f32.mrb[3].mxu0  ;;  %640 = vmatprep.subr.mxu1 %v260_v11 }
  0xf4   : > { %641 = vmatpush3.msra.mxu1 %v260_v11 }
  0xf5   : > { %643 = vmatmul.mubr.msk.f32.vlgmr.msra.gmra.mrb[2].mxu1 %vm179_vm1, %v270_v9 }
  0xf6   : > { %v265_v13 = vpop.f32.mrb[4].mxu0  ;;  %647 = vmatprep.mubr.msk.f32.mxu1 %vm179_vm1, %v269_v7 }
  0xf7   : > { %v634_v14 = vpop.f32.mrb[5].mxu0  ;;  %645 = vmatprep.subr.mxu1 %v265_v13 }
  0xf8   : > { %646 = vmatpush3.msra.mxu1 %v265_v13 }
  0xf9   : > { %648 = vmatmul.mubr.msk.f32.vlgmr.msra.gmra.mrb[4].mxu1 %vm179_vm1, %v270_v9 }
 0x1c4   : > { %v639_v15 = vpop.f32.mrb[0].mxu1 }
 0x1c5   : > { %504 = vst.msk [vmem:[%s164_s10 + $0x8] sm:$0xff] %vm502_vm2, %v639_v15  ;;  %v343_v16 = vpop.f32.mrb[1].mxu1 }
 0x1c6   : > { %503 = vst.msk [vmem:[%s164_s10] sm:$0xff] %vm502_vm2, %v343_v16 }
 0x1c8   : > { %v644_v17 = vpop.f32.mrb[2].mxu1 }
 0x1c9   : > { %506 = vst.msk [vmem:[%s164_s10 + $0x18] sm:$0xff] %vm502_vm2, %v644_v17  ;;  %v418_v18 = vpop.f32.mrb[3].mxu1 }
 0x1ca   : > { %505 = vst.msk [vmem:[%s164_s10 + $0x10] sm:$0xff] %vm502_vm2, %v418_v18 }
 0x1cc   : > { %v649_v19 = vpop.f32.mrb[4].mxu1 }
 0x1cd   : > { %508 = vst.msk [vmem:[%s164_s10 + $0x28] sm:$0xff] %vm502_vm2, %v649_v19  ;;  %v493_v20 = vpop.f32.mrb[5].mxu1 }
 0x1ce   : > { %507 = vst.msk [vmem:[%s164_s10 + $0x20] sm:$0xff] %vm502_vm2, %v493_v20 }
 0x1cf   : > { %707 = shalt.err (!%p704_p3)
}
 0x1d0   : > { %s708_s29 = scalar_lea.hbm %s867_s24, 768  ;;  %s712_s5 = scalar_lea.hbm %s915_s3, 1536 }
 0x1d1   : > { %p709_p4 = scmp.ne.s32.totalorder %s867_s24, %s708_s29  ;;  %p713_p9 = scmp.lt.u32.totalorder %s867_s24, %s915_s3 }
 0x1d2   : > { %p714_p10 = scmp.lt.u32.totalorder %s712_s5, %s708_s29  ;;  %p716_p12 = scmp.lt.u32.totalorder %s708_s29, %s867_s24 }
 0x1d3   : > { %p710_p7 = pnand %p709_p4, %p821_p5 }
 0x1d4   : > { %p715_p11 = por %p714_p10, %p713_p9 }
 0x1d5   : > { %p711_p8 = pneg %p710_p7 }
 0x1d6   : > { %p717_p13 = por %p716_p12, %p715_p11 }
 0x1d8   : > { %p718_p0 = pnand %p717_p13, %p711_p8 }
 0x1da   : > { %721 = shalt.err (!%p718_p0)
}
 0x1db   : > { %s761_s8 = smov 128   ;;  %s762_s9 = smov 8  }
 0x1dc   : > { %651 = dma.vmem_to_hbm [thread:$0]  (%p821_p5), %s862_s17, 768, %s867_s24, %s871_s16, %s761_s8, %s761_s8, %s762_s9  }
 0x1dd PF: > { %p657_p1 = scmp.ge.s32.totalorder %s756_s15, 2  ;;  %s539_s10 = sand.u32 1, %s744_s12  }
 0x1de   : > { %s540_s11 = scalar_lea.sflag [#allocation3], %s539_s10 }
 0x1df   : > { %p654_p2 = pnand %p657_p1, %p825_p6 }
 0x1e1   : > { %739 = dma.done.wait (!%p654_p2), %s540_s11, 768  }
 0x1e2   : > { %741 = vsyncadd (!%p654_p2), %s540_s11, 4294966528  ;;  %p13_p3 = scmp.ge.s32.totalorder %s808_s18, 4   ;;  %s918_s12 = smov %s748_s13 }
 0x1e3   : > { %s919_s13 = smov %s752_s14  ;;  %s920_s14 = smov %s819_s21 }
 0x1e4   : > { %s921_s15 = smov %s808_s18  ;;  %15 = sbr.rel (!%p13_p3) target bundleno = 3 (0x3), region = 67 }
 0x1eb   :  { %545 = vsyncpa [#allocation3], 1 }
 0x1ec   :  { %547 = vsyncpa [#allocation3 + $0x1], 1 }

// kernel: deeplab_forward.2
= control target key start
LH: loop header
LB: loop body
LE: loop exit
PB: predicated region body
PF: predicated region fallthrough
CT: control target
= control target key end

     0   :  { %s4922_s18 = smov 0   ;;  %s5702_s0 = inlined_call_operand.vmem [shape: bf16[2,36,4,9], index: 0, kind: input, shape index: {}]   ;;  %s5703_s1 = inlined_call_operand.vmem [shape: bf16[9,8,4], index: 1, kind: input, shape index: {}]   ;;  %s5704_s2 = inlined_call_operand.vmem [shape: f32[8,1], index: 2, kind: input, shape index: {}]   ;;  %s5705_s3 = inlined_call_operand.vmem [shape: bf16[3,8], index: 3, kind: input, shape index: {}]   ;;  %s5706_s4 = inlined_call_operand.vmem [shape: f32[3,1], index: 4, kind: input, shape index: {}]   ;;  %s5707_s5 = inlined_call_operand.vmem [shape: bf16[2,3,8,8], index: 5, kind: output, shape index: {}]  }
   0x1 LB: > { %s4107_s19 = sadd.s32 4294967295, %s4885_s18   ;;  %p4111_p0 = scmp.ge.s32.totalorder %s4885_s18, 1  ;;  %s4885_s18 = sphi %s4922_s18, %s15_s18  }
   0x2   : > { %p187_p1 = scmp.lt.s32.totalorder %s4885_s18, 3 }
   0x4   : > { %p188_p2 = pnand %p4111_p0, %p187_p1 }
   0x5   : > { %p215_p3 = scmp.lt.s32.totalorder (!%p188_p2), %s4107_s19, 1  ;;  %v965_v0 = vlaneseq (!%p188_p2)  ;;  %v4887_v1 = vmov (!%p188_p2), 1983009808   ;;  %v4888_v3 = vmov (!%p188_p2), 0.0   ;;  %vm4889_vm0 = vmmov (!%p188_p2), 0   ;;  %s4890_s24 = smov (!%p188_p2), 127  }
   0x6   : > { %191 = sbr.rel (%p188_p2) target bundleno = 808 (0x328), region = 40  ;;  %v963_v2 = vunpack.c.l.s4 (!%p188_p2), %v4887_v1  ;;  %4382 = vmatprep.subr.bf16.mxu0 (!%p188_p2), %v4888_v3  ;;  %4388 = vmatprep.subr.bf16.mxu1 (!%p188_p2), %v4888_v3  ;;  %vm267_vm1 = vcmask (!%p188_p2), 1041408   ;;  %v4986_v23 = vld [vmem:[%s5703_s1 + $0x4] sm:$0xf] (!%p188_p2)  ;;  %vm263_vm2 = vcmask (!%p188_p2), 31744   ;;  %vm3606_vm3 = vcmask (!%p188_p2), 1043456  }
   0x7   : > { %v966_v4 = vshrl.u32 (!%p188_p2), %v965_v0, 7  ;;  %4384 = vmatprep.mubr.msk.bf16.mxu0 (!%p188_p2), %vm4889_vm0, %v4888_v3  ;;  %4390 = vmatprep.mubr.msk.bf16.mxu1 (!%p188_p2), %vm4889_vm0, %v4888_v3  ;;  %v260_v54 = vld [vmem:[%s5703_s1] sm:$0xf] (!%p188_p2)  ;;  %vm3602_vm4 = vcmask (!%p188_p2), 64512   ;;  %vm3992_vm5 = vcmask (!%p188_p2), 1041409   ;;  %vm3995_vm6 = vcmask (!%p188_p2), 1042434  }
   0x8   : > { %v964_v5 = vunpack.c.0.s8 (!%p188_p2), %v963_v2  ;;  %vm3998_vm7 = vcmask (!%p188_p2), 1043459   ;;  %vm4001_vm8 = vcmask (!%p188_p2), 1044484   ;;  %vm4004_vm9 = vcmask (!%p188_p2), 1045509  }
   0x9   : > { %vm4007_vm10 = vcmask (!%p188_p2), 1046534   ;;  %vm4010_vm11 = vcmask (!%p188_p2), 1047559   ;;  %vm4014_vm12 = vcmask (!%p188_p2), 60416  }
   0xa   : > { %v4939_v6 = vsub.s32 (!%p188_p2), %v964_v5, %v966_v4 }
   0xd   : > { %s5709_s19 = smov (!%p215_p3, %s4107_s19), 1 }
   0xe   : > { %s4862_s20 = smul.u32 72, %s5709_s19 }
   0xf   : > { %s4863_s26 = smul.u32 12, %s5709_s19 }
  0x10   : > { %s4944_s23 = scalar_lea.vmem %s5702_s0, %s4862_s20 }
  0x11   : > { %v4947_v7 = vld [vmem:[%s4944_s23] sm:$0x3]  ;;  %v4950_v8 = vld [vmem:[%s4944_s23 + $0x2] sm:$0x3]  ;;  %v4953_v9 = vld [vmem:[%s4944_s23 + $0x4] sm:$0x3]  ;;  %s224_s29 = scalar_lea.vmem %s5707_s5, %s4863_s26 }
  0x12   : > { %v968_v10 = vrot.slane %v4947_v7, %v4939_v6  ;;  %v1077_v11 = vrot.slane %v4953_v9, %v4939_v6  ;;  %v4960_v12 = vld [vmem:[%s4944_s23 + $0x6] sm:$0x3]  ;;  %v235_v13 = vld [vmem:[%s4944_s23 + $0x12] sm:$0x3]  ;;  %v236_v14 = vld [vmem:[%s4944_s23 + $0x14] sm:$0x3]  ;;  %v1024_v15 = vrot.slane %v4950_v8, %v4939_v6 }
  0x13   : > { %v1130_v16 = vrot.slane %v4960_v12, %v4939_v6  ;;  %v269_v17 = vsel %vm267_vm1, %v235_v13, 0  ;;  %v4972_v18 = vsel %vm267_vm1, %v236_v14, 0  ;;  %v237_v19 = vld [vmem:[%s4944_s23 + $0x16] sm:$0x3]  ;;  %v4976_v20 = vld [vmem:[%s4944_s23 + $0x8] sm:$0x3] }
  0x14   : > { %969 = vrot.lane.b32.xlu0 %v968_v10, %s4890_s24  ;;  %1078 = vrot.lane.b32.xlu1 %v1077_v11, %s4890_s24  ;;  %v4979_v21 = vld [vmem:[%s4944_s23 + $0xa] sm:$0x3]  ;;  %v238_v22 = vld [vmem:[%s4944_s23 + $0x18] sm:$0x3]  ;;  %v4991_v24 = vsel %vm267_vm1, %v237_v19, 0  ;;  %v1183_v26 = vrot.slane %v4976_v20, %v4939_v6  ;;  %v616_v50 = vsel %vm267_vm1, %v4947_v7, 0 }
  0x15   : > { %4383 = vmatpush3.bf16.msra.mxu0 %v269_v17  ;;  %4389 = vmatpush3.bf16.msra.mxu1 %v4972_v18  ;;  %v4994_v25 = vsel %vm267_vm1, %v238_v22, 0  ;;  %v1236_v27 = vrot.slane %v4979_v21, %v4939_v6  ;;  %v5003_v28 = vld [vmem:[%s4944_s23 + $0xc] sm:$0x3]  ;;  %v5010_v29 = vld [vmem:[%s4944_s23 + $0xe] sm:$0x3]  ;;  %v5102_v51 = vsel %vm267_vm1, %v4950_v8, 0 }
  0x16   : > { %4394 = vmatprep.subr.bf16.mxu0 %v4888_v3  ;;  %4400 = vmatprep.subr.bf16.mxu1 %v4888_v3  ;;  %v1289_v30 = vrot.slane %v5003_v28, %v4939_v6  ;;  %v1342_v31 = vrot.slane %v5010_v29, %v4939_v6  ;;  %v239_v32 = vld [vmem:[%s4944_s23 + $0x1a] sm:$0x3]  ;;  %v240_v33 = vld [vmem:[%s4944_s23 + $0x1c] sm:$0x3]  ;;  %v5029_v34 = vld [vmem:[%s4944_s23 + $0x24] sm:$0x3] }
  0x17   : > { %v5032_v35 = vld [vmem:[%s4944_s23 + $0x26] sm:$0x3]  ;;  %v5035_v36 = vsel %vm267_vm1, %v239_v32, 0  ;;  %v5038_v37 = vsel %vm267_vm1, %v240_v33, 0  ;;  %v2119_v38 = vrot.slane %v5029_v34, %v4939_v6  ;;  %v241_v40 = vld [vmem:[%s4944_s23 + $0x1e] sm:$0x3] }
  0x18   : > { %1025 = vrot.lane.b32.xlu0 %v1024_v15, %s4890_s24  ;;  %1131 = vrot.lane.b32.xlu1 %v1130_v16, %s4890_s24  ;;  %v2175_v39 = vrot.slane %v5032_v35, %v4939_v6  ;;  %v242_v41 = vld [vmem:[%s4944_s23 + $0x20] sm:$0x3]  ;;  %v5063_v42 = vld [vmem:[%s4944_s23 + $0x28] sm:$0x3]  ;;  %v5069_v44 = vsel %vm267_vm1, %v241_v40, 0  ;;  %v5132_v57 = vsel %vm267_vm1, %v4953_v9, 0 }
  0x19   : > { %4385 = vmatmul.mubr.msk.bf16.vlgmr.msra.gmra.mrb[0].mxu0 %vm263_vm2, %v4986_v23  ;;  %4391 = vmatmul.mubr.msk.bf16.vlgmr.msra.gmra.mrb[0].mxu1 %vm263_vm2, %v4986_v23  ;;  %v5066_v43 = vld [vmem:[%s4944_s23 + $0x2a] sm:$0x3]  ;;  %v5072_v45 = vsel %vm267_vm1, %v242_v41, 0  ;;  %v2228_v46 = vrot.slane %v5063_v42, %v4939_v6  ;;  %v5093_v48 = vld [vmem:[%s4944_s23 + $0x2c] sm:$0x3]  ;;  %v5136_v58 = vsel %vm267_vm1, %v4960_v12, 0 }
  0x1a   : > { %4395 = vmatpush3.bf16.msra.mxu0 %v4991_v24  ;;  %4401 = vmatpush3.bf16.msra.mxu1 %v4994_v25  ;;  %v2281_v47 = vrot.slane %v5066_v43, %v4939_v6  ;;  %v5096_v49 = vld [vmem:[%s4944_s23 + $0x2e] sm:$0x3]  ;;  %v2334_v52 = vrot.slane %v5093_v48, %v4939_v6  ;;  %v5125_v55 = vld [vmem:[%s4944_s23 + $0x30] sm:$0x3]  ;;  %v5128_v56 = vld [vmem:[%s4944_s23 + $0x32] sm:$0x3] }
  0x1b   : > { %4396 = vmatprep.mubr.msk.bf16.mxu0 %vm4889_vm0, %v4888_v3  ;;  %4402 = vmatprep.mubr.msk.bf16.mxu1 %vm4889_vm0, %v4888_v3  ;;  %v2387_v53 = vrot.slane %v5096_v49, %v4939_v6  ;;  %v2440_v59 = vrot.slane %v5125_v55, %v4939_v6  ;;  %v2493_v60 = vrot.slane %v5128_v56, %v4939_v6  ;;  %v5156_v61 = vsel %vm267_vm1, %v4976_v20, 0  ;;  %v5197_v1 = vld [vmem:[%s4944_s23 + $0x10] sm:$0x3]  ;;  %v4131_v8 = vld [vmem:[%s5703_s1 + $0x8] sm:$0xf] }
  0x1c   : > { %1184 = vrot.lane.b32.xlu0 %v1183_v26, %s4890_s24  ;;  %1237 = vrot.lane.b32.xlu1 %v1236_v27, %s4890_s24  ;;  %v5160_v62 = vsel %vm267_vm1, %v4979_v21, 0  ;;  %v5174_v63 = vsel %vm267_vm1, %v5003_v28, 0  ;;  %v5178_v0 = vsel %vm267_vm1, %v5010_v29, 0  ;;  %v3511_v2 = vrot.slane %v5197_v1, %v4939_v6  ;;  %v4140_v26 = vld [vmem:[%s5703_s1 + $0xc] sm:$0xf] }
  0x1d   : > { %4406 = vmatprep.subr.bf16.mxu0 %v4888_v3  ;;  %4412 = vmatprep.subr.bf16.mxu1 %v4888_v3  ;;  %v1402_v22 = vsel %vm267_vm1, %v5029_v34, 0  ;;  %v1488_v27 = vsel %vm267_vm1, %v5063_v42, 0  ;;  %v1531_v28 = vsel %vm267_vm1, %v5066_v43, 0  ;;  %v1574_v29 = vsel %vm267_vm1, %v5093_v48, 0  ;;  %v252_v33 = vld [vmem:[%s4944_s23 + $0x36] sm:$0x3] }
  0x1e   : > { %v1703_v32 = vsel %vm267_vm1, %v5128_v56, 0  ;;  %v1759_v34 = vsel %vm267_vm1, %v252_v33, 0  ;;  %v4149_v40 = vld [vmem:[%s5703_s1 + $0x10] sm:$0xf]  ;;  %v255_v42 = vld [vmem:[%s4944_s23 + $0x3c] sm:$0x3] }
  0x1f   : > { %v1888_v43 = vsel %vm267_vm1, %v255_v42, 0  ;;  %v257_v48 = vld [vmem:[%s4944_s23 + $0x40] sm:$0x3] }
  0x20   : > { %1290 = vrot.lane.b32.xlu0 %v1289_v30, %s4890_s24  ;;  %1343 = vrot.lane.b32.xlu1 %v1342_v31, %s4890_s24  ;;  %v1617_v30 = vsel %vm267_vm1, %v5096_v49, 0  ;;  %v1660_v31 = vsel %vm267_vm1, %v5125_v55, 0  ;;  %v1974_v49 = vsel %vm267_vm1, %v257_v48, 0 }
  0x21   : > { %4397 = vmatmul.mubr.msk.bf16.vlgmr.msra.gmra.mrb[4].mxu0 %vm263_vm2, %v4986_v23  ;;  %4403 = vmatmul.mubr.msk.bf16.vlgmr.msra.gmra.mrb[4].mxu1 %vm263_vm2, %v4986_v23 }
  0x22   : > { %4407 = vmatpush3.bf16.msra.mxu0 %v5035_v36  ;;  %4413 = vmatpush3.bf16.msra.mxu1 %v5038_v37 }
  0x23   : > { %4408 = vmatprep.mubr.msk.bf16.mxu0 %vm4889_vm0, %v4888_v3  ;;  %4414 = vmatprep.mubr.msk.bf16.mxu1 %vm4889_vm0, %v4888_v3 }
  0x24   : > { %4418 = vmatprep.subr.bf16.mxu0 %v4888_v3  ;;  %4424 = vmatprep.subr.bf16.mxu1 %v4888_v3 }
  0x25   : > { %2120 = vrot.lane.b32.xlu0 %v2119_v38, %s4890_s24  ;;  %2176 = vrot.lane.b32.xlu1 %v2175_v39, %s4890_s24  ;;  %v254_v39 = vld [vmem:[%s4944_s23 + $0x3a] sm:$0x3] }
  0x26   : > { %v1845_v41 = vsel %vm267_vm1, %v254_v39, 0 }
  0x29   : > { %4409 = vmatmul.mubr.msk.bf16.vlgmr.msra.gmra.mrb[8].mxu0 %vm263_vm2, %v4986_v23  ;;  %4415 = vmatmul.mubr.msk.bf16.vlgmr.msra.gmra.mrb[8].mxu1 %vm263_vm2, %v4986_v23 }
  0x2a   : > { %4419 = vmatpush3.bf16.msra.mxu0 %v5069_v44  ;;  %4425 = vmatpush3.bf16.msra.mxu1 %v5072_v45 }
  0x2b   : > { %4420 = vmatprep.mubr.msk.bf16.mxu0 %vm4889_vm0, %v4888_v3  ;;  %4426 = vmatprep.mubr.msk.bf16.mxu1 %vm4889_vm0, %v4888_v3 }
  0x2c   : > { %4430 = vmatprep.subr.bf16.mxu0 %v4888_v3  ;;  %4436 = vmatprep.subr.bf16.mxu1 %v4888_v3 }
  0x2d   : > { %2229 = vrot.lane.b32.xlu0 %v2228_v46, %s4890_s24  ;;  %2282 = vrot.lane.b32.xlu1 %v2281_v47, %s4890_s24  ;;  %v256_v46 = vld [vmem:[%s4944_s23 + $0x3e] sm:$0x3] }
  0x2e   : > { %v1931_v47 = vsel %vm267_vm1, %v256_v46, 0 }
  0x31   : > { %4421 = vmatmul.mubr.msk.bf16.vlgmr.msra.gmra.mrb[12].mxu0 %vm263_vm2, %v4986_v23  ;;  %4427 = vmatmul.mubr.msk.bf16.vlgmr.msra.gmra.mrb[12].mxu1 %vm263_vm2, %v4986_v23  ;;  %v1445_v23 = vsel %vm267_vm1, %v5032_v35, 0  ;;  %v253_v35 = vld [vmem:[%s4944_s23 + $0x38] sm:$0x3] }
  0x32   : > { %4431 = vmatpush3.bf16.msra.mxu0 %v616_v50  ;;  %4437 = vmatpush3.bf16.msra.mxu1 %v5102_v51  ;;  %v1802_v38 = vsel %vm267_vm1, %v253_v35, 0  ;;  %v258_v50 = vld [vmem:[%s4944_s23 + $0x42] sm:$0x3] }
  0x33   : > { %4432 = vmatprep.mubr.msk.bf16.mxu0 %vm4889_vm0, %v4888_v3  ;;  %4438 = vmatprep.mubr.msk.bf16.mxu1 %vm4889_vm0, %v4888_v3 }
  0x34   : > { %4442 = vmatprep.subr.bf16.mxu0 %v4888_v3  ;;  %4448 = vmatprep.subr.bf16.mxu1 %v4888_v3 }
  0x35   : > { %2335 = vrot.lane.b32.xlu0 %v2334_v52, %s4890_s24  ;;  %2388 = vrot.lane.b32.xlu1 %v2387_v53, %s4890_s24  ;;  %v2017_v52 = vsel %vm267_vm1, %v258_v50, 0  ;;  %v259_v53 = vld [vmem:[%s4944_s23 + $0x44] sm:$0x3] }
  0x39   : > { %4433 = vmatmul.mubr.msk.bf16.vlgmr.msra.gmra.mrb[16].mxu0 %vm263_vm2, %v260_v54  ;;  %4439 = vmatmul.mubr.msk.bf16.vlgmr.msra.gmra.mrb[16].mxu1 %vm263_vm2, %v260_v54 }
  0x3a   : > { %4443 = vmatpush3.bf16.msra.mxu0 %v5132_v57  ;;  %4449 = vmatpush3.bf16.msra.mxu1 %v5136_v58 }
  0x3b   : > { %4444 = vmatprep.mubr.msk.bf16.mxu0 %vm4889_vm0, %v4888_v3  ;;  %4450 = vmatprep.mubr.msk.bf16.mxu1 %vm4889_vm0, %v4888_v3 }
  0x3c   : > { %4454 = vmatprep.subr.bf16.mxu0 %v4888_v3  ;;  %4460 = vmatprep.subr.bf16.mxu1 %v4888_v3 }
  0x3d   : > { %2441 = vrot.lane.b32.xlu0 %v2440_v59, %s4890_s24  ;;  %2494 = vrot.lane.b32.xlu1 %v2493_v60, %s4890_s24 }
  0x41   : > { %4445 = vmatmul.mubr.msk.bf16.vlgmr.msra.gmra.mrb[20].mxu0 %vm263_vm2, %v260_v54  ;;  %4451 = vmatmul.mubr.msk.bf16.vlgmr.msra.gmra.mrb[20].mxu1 %vm263_vm2, %v260_v54 }
  0x42   : > { %4455 = vmatpush3.bf16.msra.mxu0 %v5156_v61  ;;  %4461 = vmatpush3.bf16.msra.mxu1 %v5160_v62 }
  0x43   : > { %4456 = vmatprep.mubr.msk.bf16.mxu0 %vm4889_vm0, %v4888_v3  ;;  %4462 = vmatprep.mubr.msk.bf16.mxu1 %vm4889_vm0, %v4888_v3 }
  0x44   : > { %4466 = vmatprep.subr.bf16.mxu0 %v4888_v3  ;;  %4472 = vmatprep.subr.bf16.mxu1 %v4888_v3 }
  0x45   : > { %3512 = vrot.lane.b32.xlu0 %v3511_v2, %s4890_s24 }
  0x49   : > { %4457 = vmatmul.mubr.msk.bf16.vlgmr.msra.gmra.mrb[24].mxu0 %vm263_vm2, %v260_v54  ;;  %4463 = vmatmul.mubr.msk.bf16.vlgmr.msra.gmra.mrb[24].mxu1 %vm263_vm2, %v260_v54 }
  0x4a   : > { %4467 = vmatpush3.bf16.msra.mxu0 %v5174_v63  ;;  %4473 = vmatpush3.bf16.msra.mxu1 %v5178_v0 }
  0x4b   : > { %4468 = vmatprep.mubr.msk.bf16.mxu0 %vm4889_vm0, %v4888_v3  ;;  %4474 = vmatprep.mubr.msk.bf16.mxu1 %vm4889_vm0, %v4888_v3 }
  0x4c   : > { %4478 = vmatprep.subr.bf16.mxu0 %v4888_v3  ;;  %4484 = vmatprep.subr.bf16.mxu1 %v4888_v3 }
  0x51   : > { %4469 = vmatmul.mubr.msk.bf16.vlgmr.msra.gmra.mrb[28].mxu0 %vm263_vm2, %v260_v54  ;;  %4475 = vmatmul.mubr.msk.bf16.vlgmr.msra.gmra.mrb[28].mxu1 %vm263_vm2, %v260_v54  ;;  %v2060_v54 = vsel %vm267_vm1, %v259_v53, 0 }
  0x52   : > { %4480 = vmatprep.mubr.msk.bf16.mxu0 %vm4889_vm0, %v4888_v3  ;;  %4486 = vmatprep.mubr.msk.bf16.mxu1 %vm4889_vm0, %v4888_v3 }
  0x86   : > { %v970_v4 = vpop.permute.xlu0 %969  ;;  %v1079_v5 = vpop.permute.xlu1 %1078 }
  0x87   : > { %v975_v7 = vsel %vm267_vm1, %v970_v4, 0  ;;  %v5207_v9 = vsel %vm267_vm1, %v1079_v5, 0  ;;  %v5372_v4 = vld [vmem:[%s5703_s1 + $0x14] sm:$0xf] }
  0x88   : > { %4479 = vmatpush3.bf16.msra.mxu0 %v975_v7 }
  0x89   : > { %4490 = vmatprep.subr.bf16.mxu0 %v4888_v3 }
  0x8a   : > { %v1026_v10 = vpop.permute.xlu0 %1025  ;;  %v1132_v11 = vpop.permute.xlu1 %1131 }
  0x8b   : > { %v5211_v6 = vsel %vm267_vm1, %v1026_v10, 0  ;;  %4481 = vmatmul.mubr.msk.bf16.vlgmr.msra.gmra.mrb[32].mxu0 %vm263_vm2, %v4131_v8  ;;  %v5217_v12 = vsel %vm267_vm1, %v1132_v11, 0 }
  0x8c   : > { %4485 = vmatpush3.bf16.msra.mxu1 %v5211_v6  ;;  %4491 = vmatpush3.bf16.msra.mxu0 %v5207_v9 }
  0x8d   : > { %4492 = vmatprep.mubr.msk.bf16.mxu0 %vm4889_vm0, %v4888_v3  ;;  %4496 = vmatprep.subr.bf16.mxu1 %v4888_v3 }
  0x8e   : > { %v1185_v13 = vpop.permute.xlu0 %1184  ;;  %4502 = vmatprep.subr.bf16.mxu0 %v4888_v3  ;;  %v1238_v15 = vpop.permute.xlu1 %1237 }
  0x8f   : > { %4487 = vmatmul.mubr.msk.bf16.vlgmr.msra.gmra.mrb[32].mxu1 %vm263_vm2, %v4131_v8  ;;  %v5228_v14 = vsel %vm267_vm1, %v1185_v13, 0  ;;  %v5236_v16 = vsel %vm267_vm1, %v1238_v15, 0 }
  0x90   : > { %4497 = vmatpush3.bf16.msra.mxu1 %v5217_v12  ;;  %4498 = vmatprep.mubr.msk.bf16.mxu1 %vm4889_vm0, %v4888_v3 }
  0x91   : > { %4508 = vmatprep.subr.bf16.mxu1 %v4888_v3 }
  0x92   : > { %v1291_v17 = vpop.permute.xlu0 %1290  ;;  %v1344_v20 = vpop.permute.xlu1 %1343 }
  0x93   : > { %4493 = vmatmul.mubr.msk.bf16.vlgmr.msra.gmra.mrb[36].mxu0 %vm263_vm2, %v4131_v8  ;;  %v5244_v19 = vsel %vm267_vm1, %v1291_v17, 0  ;;  %v5252_v21 = vsel %vm267_vm1, %v1344_v20, 0 }
  0x94   : > { %4503 = vmatpush3.bf16.msra.mxu0 %v5228_v14  ;;  %4504 = vmatprep.mubr.msk.bf16.mxu0 %vm4889_vm0, %v4888_v3 }
  0x95   : > { %4514 = vmatprep.subr.bf16.mxu0 %v4888_v3 }
  0x97   : > { %4499 = vmatmul.mubr.msk.bf16.vlgmr.msra.gmra.mrb[36].mxu1 %vm263_vm2, %v4131_v8  ;;  %v2121_v55 = vpop.permute.xlu0 %2120  ;;  %v2177_v59 = vpop.permute.xlu1 %2176 }
  0x98   : > { %4509 = vmatpush3.bf16.msra.mxu1 %v5236_v16  ;;  %4510 = vmatprep.mubr.msk.bf16.mxu1 %vm4889_vm0, %v4888_v3  ;;  %v2126_v56 = vsel %vm267_vm1, %v2121_v55, 0  ;;  %v2179_v60 = vsel %vm267_vm1, %v2177_v59, 0 }
  0x99   : > { %4520 = vmatprep.subr.bf16.mxu1 %v4888_v3 }
  0x9b   : > { %4505 = vmatmul.mubr.msk.bf16.vlgmr.msra.gmra.mrb[40].mxu0 %vm263_vm2, %v4131_v8 }
  0x9c   : > { %4515 = vmatpush3.bf16.msra.mxu0 %v5244_v19  ;;  %4516 = vmatprep.mubr.msk.bf16.mxu0 %vm4889_vm0, %v4888_v3 }
  0x9d   : > { %4526 = vmatprep.subr.bf16.mxu0 %v4888_v3 }
  0x9f   : > { %4511 = vmatmul.mubr.msk.bf16.vlgmr.msra.gmra.mrb[40].mxu1 %vm263_vm2, %v4131_v8  ;;  %v2230_v2 = vpop.permute.xlu0 %2229  ;;  %v2283_v7 = vpop.permute.xlu1 %2282 }
  0xa0   : > { %4521 = vmatpush3.bf16.msra.mxu1 %v5252_v21  ;;  %4522 = vmatprep.mubr.msk.bf16.mxu1 %vm4889_vm0, %v4888_v3  ;;  %v2232_v5 = vsel %vm267_vm1, %v2230_v2, 0  ;;  %v2285_v13 = vsel %vm267_vm1, %v2283_v7, 0 }
  0xa1   : > { %4532 = vmatprep.subr.bf16.mxu1 %v4888_v3 }
  0xa3   : > { %4517 = vmatmul.mubr.msk.bf16.vlgmr.msra.gmra.mrb[44].mxu0 %vm263_vm2, %v4131_v8 }
  0xa4   : > { %4527 = vmatpush3.bf16.msra.mxu0 %v1402_v22  ;;  %4528 = vmatprep.mubr.msk.bf16.mxu0 %vm4889_vm0, %v4888_v3 }
  0xa5   : > { %4538 = vmatprep.subr.bf16.mxu0 %v4888_v3 }
  0xa7   : > { %4523 = vmatmul.mubr.msk.bf16.vlgmr.msra.gmra.mrb[44].mxu1 %vm263_vm2, %v4131_v8  ;;  %v2336_v8 = vpop.permute.xlu0 %2335 }
  0xa8   : > { %4533 = vmatpush3.bf16.msra.mxu1 %v1445_v23  ;;  %4534 = vmatprep.mubr.msk.bf16.mxu1 %vm4889_vm0, %v4888_v3 }
  0xa9   : > { %4544 = vmatprep.subr.bf16.mxu1 %v4888_v3 }
  0xab   : > { %4529 = vmatmul.mubr.msk.bf16.vlgmr.msra.gmra.mrb[48].mxu0 %vm263_vm2, %v4140_v26 }
  0xac   : > { %4539 = vmatpush3.bf16.msra.mxu0 %v1488_v27  ;;  %4540 = vmatprep.mubr.msk.bf16.mxu0 %vm4889_vm0, %v4888_v3  ;;  %v2338_v27 = vsel %vm267_vm1, %v2336_v8, 0 }
  0xad   : > { %4550 = vmatprep.subr.bf16.mxu0 %v4888_v3 }
  0xaf   : > { %4535 = vmatmul.mubr.msk.bf16.vlgmr.msra.gmra.mrb[48].mxu1 %vm263_vm2, %v4140_v26 }
  0xb0   : > { %4545 = vmatpush3.bf16.msra.mxu1 %v1531_v28  ;;  %4546 = vmatprep.mubr.msk.bf16.mxu1 %vm4889_vm0, %v4888_v3  ;;  %v2389_v28 = vpop.permute.xlu1 %2388 }
  0xb1   : > { %4556 = vmatprep.subr.bf16.mxu1 %v4888_v3 }
  0xb3   : > { %4541 = vmatmul.mubr.msk.bf16.vlgmr.msra.gmra.mrb[52].mxu0 %vm263_vm2, %v4140_v26 }
  0xb4   : > { %4551 = vmatpush3.bf16.msra.mxu0 %v1574_v29  ;;  %4552 = vmatprep.mubr.msk.bf16.mxu0 %vm4889_vm0, %v4888_v3  ;;  %v2442_v29 = vpop.permute.xlu0 %2441  ;;  %v2495_v42 = vpop.permute.xlu1 %2494 }
  0xb5   : > { %4562 = vmatprep.subr.bf16.mxu0 %v4888_v3 }
  0xb7   : > { %4547 = vmatmul.mubr.msk.bf16.vlgmr.msra.gmra.mrb[52].mxu1 %vm263_vm2, %v4140_v26 }
  0xb8   : > { %4557 = vmatpush3.bf16.msra.mxu1 %v1617_v30  ;;  %4558 = vmatprep.mubr.msk.bf16.mxu1 %vm4889_vm0, %v4888_v3 }
  0xb9   : > { %4568 = vmatprep.subr.bf16.mxu1 %v4888_v3 }
  0xbb   : > { %4553 = vmatmul.mubr.msk.bf16.vlgmr.msra.gmra.mrb[56].mxu0 %vm263_vm2, %v4140_v26 }
  0xbc   : > { %4563 = vmatpush3.bf16.msra.mxu0 %v1660_v31  ;;  %4564 = vmatprep.mubr.msk.bf16.mxu0 %vm4889_vm0, %v4888_v3 }
  0xbd   : > { %4574 = vmatprep.subr.bf16.mxu0 %v4888_v3 }
  0xbf   : > { %4559 = vmatmul.mubr.msk.bf16.vlgmr.msra.gmra.mrb[56].mxu1 %vm263_vm2, %v4140_v26 }
  0xc0   : > { %4569 = vmatpush3.bf16.msra.mxu1 %v1703_v32  ;;  %4570 = vmatprep.mubr.msk.bf16.mxu1 %vm4889_vm0, %v4888_v3  ;;  %v2391_v32 = vsel %vm267_vm1, %v2389_v28, 0 }
  0xc1   : > { %4580 = vmatprep.subr.bf16.mxu1 %v4888_v3 }
  0xc3   : > { %4565 = vmatmul.mubr.msk.bf16.vlgmr.msra.gmra.mrb[60].mxu0 %vm263_vm2, %v4140_v26 }
  0xc4   : > { %4575 = vmatpush3.bf16.msra.mxu0 %v1759_v34  ;;  %4576 = vmatprep.mubr.msk.bf16.mxu0 %vm4889_vm0, %v4888_v3 }
  0xc5   : > { %4586 = vmatprep.subr.bf16.mxu0 %v4888_v3 }
  0xc7   : > { %4571 = vmatmul.mubr.msk.bf16.vlgmr.msra.gmra.mrb[60].mxu1 %vm263_vm2, %v4140_v26 }
  0xc8   : > { %4581 = vmatpush3.bf16.msra.mxu1 %v1802_v38  ;;  %4582 = vmatprep.mubr.msk.bf16.mxu1 %vm4889_vm0, %v4888_v3 }
  0xc9   : > { %4592 = vmatprep.subr.bf16.mxu1 %v4888_v3 }
  0xcb   : > { %4577 = vmatmul.mubr.msk.bf16.vlgmr.msra.gmra.mrb[64].mxu0 %vm263_vm2, %v4149_v40 }
  0xcc   : > { %4587 = vmatpush3.bf16.msra.mxu0 %v1845_v41  ;;  %4588 = vmatprep.mubr.msk.bf16.mxu0 %vm4889_vm0, %v4888_v3  ;;  %v2444_v41 = vsel %vm267_vm1, %v2442_v29, 0 }
  0xcd   : > { %4598 = vmatprep.subr.bf16.mxu0 %v4888_v3 }
  0xcf   : > { %4583 = vmatmul.mubr.msk.bf16.vlgmr.msra.gmra.mrb[64].mxu1 %vm263_vm2, %v4149_v40 }
  0xd0   : > { %4593 = vmatpush3.bf16.msra.mxu1 %v1888_v43  ;;  %4594 = vmatprep.mubr.msk.bf16.mxu1 %vm4889_vm0, %v4888_v3 }
  0xd1   : > { %4604 = vmatprep.subr.bf16.mxu1 %v4888_v3 }
  0xd3   : > { %4589 = vmatmul.mubr.msk.bf16.vlgmr.msra.gmra.mrb[68].mxu0 %vm263_vm2, %v4149_v40 }
  0xd4   : > { %4599 = vmatpush3.bf16.msra.mxu0 %v1931_v47  ;;  %4600 = vmatprep.mubr.msk.bf16.mxu0 %vm4889_vm0, %v4888_v3  ;;  %v2497_v47 = vsel %vm267_vm1, %v2495_v42, 0 }
  0xd5   : > { %4610 = vmatprep.subr.bf16.mxu0 %v4888_v3 }
  0xd7   : > { %4595 = vmatmul.mubr.msk.bf16.vlgmr.msra.gmra.mrb[68].mxu1 %vm263_vm2, %v4149_v40 }
  0xd8   : > { %4605 = vmatpush3.bf16.msra.mxu1 %v1974_v49  ;;  %4606 = vmatprep.mubr.msk.bf16.mxu1 %vm4889_vm0, %v4888_v3 }
  0xd9   : > { %4616 = vmatprep.subr.bf16.mxu1 %v4888_v3 }
  0xdb   : > { %4601 = vmatmul.mubr.msk.bf16.vlgmr.msra.gmra.mrb[72].mxu0 %vm263_vm2, %v4149_v40 }
  0xdc   : > { %4611 = vmatpush3.bf16.msra.mxu0 %v2017_v52  ;;  %4612 = vmatprep.mubr.msk.bf16.mxu0 %vm4889_vm0, %v4888_v3 }
  0xdd   : > { %4622 = vmatprep.subr.bf16.mxu0 %v4888_v3 }
  0xdf   : > { %4607 = vmatmul.mubr.msk.bf16.vlgmr.msra.gmra.mrb[72].mxu1 %vm263_vm2, %v4149_v40 }
  0xe0   : > { %4617 = vmatpush3.bf16.msra.mxu1 %v2060_v54  ;;  %4618 = vmatprep.mubr.msk.bf16.mxu1 %vm4889_vm0, %v4888_v3 }
  0xe1   : > { %4628 = vmatprep.subr.bf16.mxu1 %v4888_v3 }
  0xe3   : > { %4613 = vmatmul.mubr.msk.bf16.vlgmr.msra.gmra.mrb[76].mxu0 %vm263_vm2, %v4149_v40 }
  0xe4   : > { %4623 = vmatpush3.bf16.msra.mxu0 %v2126_v56  ;;  %4624 = vmatprep.mubr.msk.bf16.mxu0 %vm4889_vm0, %v4888_v3 }
  0xe5   : > { %4634 = vmatprep.subr.bf16.mxu0 %v4888_v3 }
  0xe7   : > { %4619 = vmatmul.mubr.msk.bf16.vlgmr.msra.gmra.mrb[76].mxu1 %vm263_vm2, %v4149_v40 }
  0xe8   : > { %4629 = vmatpush3.bf16.msra.mxu1 %v2179_v60  ;;  %4630 = vmatprep.mubr.msk.bf16.mxu1 %vm4889_vm0, %v4888_v3 }
  0xe9   : > { %4640 = vmatprep.subr.bf16.mxu1 %v4888_v3 }
  0xeb   : > { %4625 = vmatmul.mubr.msk.bf16.vlgmr.msra.gmra.mrb[80].mxu0 %vm263_vm2, %v5372_v4 }
  0xec   : > { %4635 = vmatpush3.bf16.msra.mxu0 %v2232_v5  ;;  %4636 = vmatprep.mubr.msk.bf16.mxu0 %vm4889_vm0, %v4888_v3  ;;  %v5382_v10 = vpop.f32.mrb[0].mxu0  ;;  %v5384_v11 = vpop.f32.mrb[0].mxu1 }
  0xed   : > { %4646 = vmatprep.subr.bf16.mxu0 %v4888_v3  ;;  %v4386_v15 = vpop.f32.mrb[1].mxu0  ;;  %v4392_v17 = vpop.f32.mrb[1].mxu1 }
  0xee   : > { %v308_v20 = vpop.f32.mrb[2].mxu0  ;;  %v351_v22 = vpop.f32.mrb[2].mxu1 }
  0xef   : > { %4631 = vmatmul.mubr.msk.bf16.vlgmr.msra.gmra.mrb[80].mxu1 %vm263_vm2, %v5372_v4  ;;  %v4387_v23 = vpop.f32.mrb[3].mxu0  ;;  %v4393_v26 = vpop.f32.mrb[3].mxu1 }
  0xf0   : > { %4641 = vmatpush3.bf16.msra.mxu1 %v2285_v13  ;;  %4642 = vmatprep.mubr.msk.bf16.mxu1 %vm4889_vm0, %v4888_v3 }
  0xf1   : > { %4652 = vmatprep.subr.bf16.mxu1 %v4888_v3 }
  0xf3   : > { %4637 = vmatmul.mubr.msk.bf16.vlgmr.msra.gmra.mrb[84].mxu0 %vm263_vm2, %v5372_v4 }
  0xf4   : > { %4647 = vmatpush3.bf16.msra.mxu0 %v2338_v27  ;;  %4648 = vmatprep.mubr.msk.bf16.mxu0 %vm4889_vm0, %v4888_v3  ;;  %v5398_v30 = vpop.f32.mrb[4].mxu0  ;;  %v5400_v31 = vpop.f32.mrb[4].mxu1 }
  0xf5   : > { %4658 = vmatprep.subr.bf16.mxu0 %v4888_v3  ;;  %v4398_v33 = vpop.f32.mrb[5].mxu0  ;;  %v4404_v34 = vpop.f32.mrb[5].mxu1 }
  0xf6   : > { %v394_v35 = vpop.f32.mrb[6].mxu0  ;;  %v437_v38 = vpop.f32.mrb[6].mxu1 }
  0xf7   : > { %4643 = vmatmul.mubr.msk.bf16.vlgmr.msra.gmra.mrb[84].mxu1 %vm263_vm2, %v5372_v4  ;;  %v4399_v39 = vpop.f32.mrb[7].mxu0  ;;  %v4405_v40 = vpop.f32.mrb[7].mxu1  ;;  %v2833_v35 = vsel %vm267_vm1, %v5197_v1, 0  ;;  %v3565_v1 = vld [vmem:[%s5704_s2] sm:$0xff] }
  0xf8   : > { %4653 = vmatpush3.bf16.msra.mxu1 %v2391_v32  ;;  %4654 = vmatprep.mubr.msk.bf16.mxu1 %vm4889_vm0, %v4888_v3 }
  0xf9   : > { %4664 = vmatprep.subr.bf16.mxu1 %v4888_v3 }
  0xfb   : > { %4649 = vmatmul.mubr.msk.bf16.vlgmr.msra.gmra.mrb[88].mxu0 %vm263_vm2, %v5372_v4 }
  0xfc   : > { %4659 = vmatpush3.bf16.msra.mxu0 %v2444_v41  ;;  %4660 = vmatprep.mubr.msk.bf16.mxu0 %vm4889_vm0, %v4888_v3  ;;  %v5414_v43 = vpop.f32.mrb[8].mxu0  ;;  %v5416_v46 = vpop.f32.mrb[8].mxu1 }
  0xfd   : > { %4670 = vmatprep.subr.bf16.mxu0 %v4888_v3  ;;  %v4410_v48 = vpop.f32.mrb[9].mxu0  ;;  %v4416_v49 = vpop.f32.mrb[9].mxu1 }
  0xfe   : > { %v480_v50 = vpop.f32.mrb[10].mxu0  ;;  %v523_v52 = vpop.f32.mrb[10].mxu1 }
  0xff   : > { %4655 = vmatmul.mubr.msk.bf16.vlgmr.msra.gmra.mrb[88].mxu1 %vm263_vm2, %v5372_v4  ;;  %v4411_v53 = vpop.f32.mrb[11].mxu0  ;;  %v4417_v54 = vpop.f32.mrb[11].mxu1 }
 0x100   : > { %4665 = vmatpush3.bf16.msra.mxu1 %v2497_v47  ;;  %4666 = vmatprep.mubr.msk.bf16.mxu1 %vm4889_vm0, %v4888_v3 }
 0x101   : > { %4676 = vmatprep.subr.bf16.mxu1 %v4888_v3 }
 0x103   : > { %4661 = vmatmul.mubr.msk.bf16.vlgmr.msra.gmra.mrb[92].mxu0 %vm263_vm2, %v5372_v4 }
 0x104   : > { %4671 = vmatpush3.bf16.msra.mxu0 %v5102_v51  ;;  %4672 = vmatprep.mubr.msk.bf16.mxu0 %vm4889_vm0, %v4888_v3  ;;  %v5430_v55 = vpop.f32.mrb[12].mxu0  ;;  %v5432_v56 = vpop.f32.mrb[12].mxu1  ;;  %v5440_v51 = vld [vmem:[%s5703_s1 + $0x18] sm:$0xf] }
 0x105   : > { %4682 = vmatprep.subr.bf16.mxu0 %v4888_v3  ;;  %v4422_v59 = vpop.f32.mrb[13].mxu0  ;;  %v4428_v60 = vpop.f32.mrb[13].mxu1 }
 0x106   : > { %v566_v2 = vpop.f32.mrb[14].mxu0  ;;  %v609_v5 = vpop.f32.mrb[14].mxu1 }
 0x107   : > { %4667 = vmatmul.mubr.msk.bf16.vlgmr.msra.gmra.mrb[92].mxu1 %vm263_vm2, %v5372_v4  ;;  %v4423_v7 = vpop.f32.mrb[15].mxu0  ;;  %v4429_v8 = vpop.f32.mrb[15].mxu1  ;;  %v4176_v2 = vld [vmem:[%s5703_s1 + $0x1c] sm:$0xf] }
 0x108   : > { %4677 = vmatpush3.bf16.msra.mxu1 %v5132_v57  ;;  %4678 = vmatprep.mubr.msk.bf16.mxu1 %vm4889_vm0, %v4888_v3 }
 0x109   : > { %4688 = vmatprep.subr.bf16.mxu1 %v4888_v3 }
 0x10b   : > { %4673 = vmatmul.mubr.msk.bf16.vlgmr.msra.gmra.mrb[96].mxu0 %vm263_vm2, %v5440_v51 }
 0x10c   : > { %4683 = vmatpush3.bf16.msra.mxu0 %v5136_v58  ;;  %4684 = vmatprep.mubr.msk.bf16.mxu0 %vm4889_vm0, %v4888_v3  ;;  %v652_v4 = vpop.f32.mrb[16].mxu0  ;;  %v695_v13 = vpop.f32.mrb[16].mxu1 }
 0x10d   : > { %4694 = vmatprep.subr.bf16.mxu0 %v4888_v3  ;;  %v5453_v15 = vadd.f32 %v652_v4, %v5382_v10  ;;  %v5456_v57 = vadd.f32 %v695_v13, %v5384_v11  ;;  %v4434_v17 = vpop.f32.mrb[17].mxu0  ;;  %v4440_v20 = vpop.f32.mrb[17].mxu1 }
 0x10e   : > { %v655_v22 = vpop.f32.mrb[18].mxu0  ;;  %v698_v23 = vpop.f32.mrb[18].mxu1 }
 0x10f   : > { %4679 = vmatmul.mubr.msk.bf16.vlgmr.msra.gmra.mrb[96].mxu1 %vm263_vm2, %v5440_v51  ;;  %v4435_v58 = vpop.f32.mrb[19].mxu0  ;;  %v4441_v26 = vpop.f32.mrb[19].mxu1 }
 0x110   : > { %4689 = vmatpush3.bf16.msra.mxu1 %v5156_v61  ;;  %4690 = vmatprep.mubr.msk.bf16.mxu1 %vm4889_vm0, %v4888_v3 }
 0x111   : > { %4700 = vmatprep.subr.bf16.mxu1 %v4888_v3 }
 0x113   : > { %4685 = vmatmul.mubr.msk.bf16.vlgmr.msra.gmra.mrb[100].mxu0 %vm263_vm2, %v5440_v51 }
 0x114   : > { %4695 = vmatpush3.bf16.msra.mxu0 %v5160_v62  ;;  %4696 = vmatprep.mubr.msk.bf16.mxu0 %vm4889_vm0, %v4888_v3  ;;  %v738_v10 = vpop.f32.mrb[20].mxu0  ;;  %v781_v11 = vpop.f32.mrb[20].mxu1 }
 0x115   : > { %4706 = vmatprep.subr.bf16.mxu0 %v4888_v3  ;;  %v5471_v27 = vadd.f32 %v738_v10, %v5398_v30  ;;  %v5474_v61 = vadd.f32 %v781_v11, %v5400_v31  ;;  %v4446_v28 = vpop.f32.mrb[21].mxu0  ;;  %v4452_v29 = vpop.f32.mrb[21].mxu1 }
 0x116   : > { %v741_v32 = vpop.f32.mrb[22].mxu0  ;;  %v784_v33 = vpop.f32.mrb[22].mxu1 }
 0x117   : > { %4691 = vmatmul.mubr.msk.bf16.vlgmr.msra.gmra.mrb[100].mxu1 %vm263_vm2, %v5440_v51  ;;  %v4447_v62 = vpop.f32.mrb[23].mxu0  ;;  %v4453_v34 = vpop.f32.mrb[23].mxu1 }
 0x118   : > { %4701 = vmatpush3.bf16.msra.mxu1 %v5174_v63  ;;  %4702 = vmatprep.mubr.msk.bf16.mxu1 %vm4889_vm0, %v4888_v3 }
 0x119   : > { %4712 = vmatprep.subr.bf16.mxu1 %v4888_v3 }
 0x11b   : > { %4697 = vmatmul.mubr.msk.bf16.vlgmr.msra.gmra.mrb[104].mxu0 %vm263_vm2, %v5440_v51 }
 0x11c   : > { %4707 = vmatpush3.bf16.msra.mxu0 %v5178_v0  ;;  %4708 = vmatprep.mubr.msk.bf16.mxu0 %vm4889_vm0, %v4888_v3  ;;  %v824_v30 = vpop.f32.mrb[24].mxu0  ;;  %v867_v31 = vpop.f32.mrb[24].mxu1 }
 0x11d   : > { %4718 = vmatprep.subr.bf16.mxu0 %v4888_v3  ;;  %v5491_v63 = vadd.f32 %v824_v30, %v5414_v43  ;;  %v5494_v38 = vadd.f32 %v867_v31, %v5416_v46  ;;  %v4458_v39 = vpop.f32.mrb[25].mxu0  ;;  %v4464_v40 = vpop.f32.mrb[25].mxu1  ;;  %v4891_v43 = vmov 0  }
 0x11e   : > { %v827_v41 = vpop.f32.mrb[26].mxu0  ;;  %v870_v0 = vpop.f32.mrb[26].mxu1  ;;  %4877 = vset.pattern.permute.xlu1 %v4891_v43  ;;  %4878 = vset.pattern.permute.xlu0 %v4891_v43 }
 0x11f   : > { %4703 = vmatmul.mubr.msk.bf16.vlgmr.msra.gmra.mrb[104].mxu1 %vm263_vm2, %v5440_v51  ;;  %v4459_v42 = vpop.f32.mrb[27].mxu0  ;;  %v4465_v47 = vpop.f32.mrb[27].mxu1  ;;  %3568 = vperm.xlu1 %4877, %v3565_v1  }
 0x120   : > { %4713 = vmatpush3.bf16.msra.mxu1 %v2833_v35  ;;  %4714 = vmatprep.mubr.msk.bf16.mxu1 %vm4889_vm0, %v4888_v3 }
 0x121   : > { %4724 = vmatprep.subr.bf16.mxu1 %v4888_v3 }
 0x123   : > { %4709 = vmatmul.mubr.msk.bf16.vlgmr.msra.gmra.mrb[108].mxu0 %vm263_vm2, %v5440_v51 }
 0x124   : > { %4719 = vmatpush3.bf16.msra.mxu0 %v4972_v18  ;;  %4720 = vmatprep.mubr.msk.bf16.mxu0 %vm4889_vm0, %v4888_v3  ;;  %v910_v46 = vpop.f32.mrb[28].mxu0  ;;  %v953_v48 = vpop.f32.mrb[28].mxu1 }
 0x125   : > { %4730 = vmatprep.subr.bf16.mxu0 %v4888_v3  ;;  %v5511_v49 = vadd.f32 %v910_v46, %v5430_v55  ;;  %v5514_v50 = vadd.f32 %v953_v48, %v5432_v56  ;;  %v4470_v52 = vpop.f32.mrb[29].mxu0  ;;  %v4476_v53 = vpop.f32.mrb[29].mxu1 }
 0x126   : > { %v913_v54 = vpop.f32.mrb[30].mxu0  ;;  %v956_v59 = vpop.f32.mrb[30].mxu1 }
 0x127   : > { %4715 = vmatmul.mubr.msk.bf16.vlgmr.msra.gmra.mrb[108].mxu1 %vm263_vm2, %v5440_v51  ;;  %v4471_v18 = vpop.f32.mrb[31].mxu0  ;;  %v4477_v60 = vpop.f32.mrb[31].mxu1 }
 0x128   : > { %4725 = vmatpush3.bf16.msra.mxu1 %v4991_v24  ;;  %4726 = vmatprep.mubr.msk.bf16.mxu1 %vm4889_vm0, %v4888_v3  ;;  %v243_v24 = vld [vmem:[%s4944_s23 + $0x22] sm:$0x3] }
 0x129   : > { %4736 = vmatprep.subr.bf16.mxu1 %v4888_v3 }
 0x12b   : > { %4721 = vmatmul.mubr.msk.bf16.vlgmr.msra.gmra.mrb[112].mxu0 %vm263_vm2, %v4176_v2 }
 0x12c   : > { %4731 = vmatpush3.bf16.msra.mxu0 %v4994_v25  ;;  %4732 = vmatprep.mubr.msk.bf16.mxu0 %vm4889_vm0, %v4888_v3  ;;  %v3169_v25 = vsel %vm267_vm1, %v243_v24, 0 }
 0x12d   : > { %4742 = vmatprep.subr.bf16.mxu0 %v4888_v3 }
 0x12f   : > { %4727 = vmatmul.mubr.msk.bf16.vlgmr.msra.gmra.mrb[112].mxu1 %vm263_vm2, %v4176_v2 }
 0x130   : > { %4737 = vmatpush3.bf16.msra.mxu1 %v5035_v36  ;;  %4738 = vmatprep.mubr.msk.bf16.mxu1 %vm4889_vm0, %v4888_v3  ;;  %v4185_v36 = vld [vmem:[%s5703_s1 + $0x20] sm:$0xf] }
 0x131   : > { %4748 = vmatprep.subr.bf16.mxu1 %v4888_v3 }
 0x133   : > { %4733 = vmatmul.mubr.msk.bf16.vlgmr.msra.gmra.mrb[116].mxu0 %vm263_vm2, %v4176_v2 }
 0x134   : > { %4743 = vmatpush3.bf16.msra.mxu0 %v5038_v37  ;;  %4744 = vmatprep.mubr.msk.bf16.mxu0 %vm4889_vm0, %v4888_v3  ;;  %v3513_v37 = vpop.permute.xlu0 %3512 }
 0x135   : > { %4754 = vmatprep.subr.bf16.mxu0 %v4888_v3 }
 0x137   : > { %4739 = vmatmul.mubr.msk.bf16.vlgmr.msra.gmra.mrb[116].mxu1 %vm263_vm2, %v4176_v2 }
 0x138   : > { %4749 = vmatpush3.bf16.msra.mxu1 %v5069_v44  ;;  %4750 = vmatprep.mubr.msk.bf16.mxu1 %vm4889_vm0, %v4888_v3  ;;  %v3515_v44 = vsel %vm267_vm1, %v3513_v37, 0 }
 0x139   : > { %4760 = vmatprep.subr.bf16.mxu1 %v4888_v3 }
 0x13b   : > { %4745 = vmatmul.mubr.msk.bf16.vlgmr.msra.gmra.mrb[120].mxu0 %vm263_vm2, %v4176_v2 }
 0x13c   : > { %4755 = vmatpush3.bf16.msra.mxu0 %v5072_v45  ;;  %4756 = vmatprep.mubr.msk.bf16.mxu0 %vm4889_vm0, %v4888_v3 }
 0x13d   : > { %4766 = vmatprep.subr.bf16.mxu0 %v4888_v3 }
 0x13f   : > { %4751 = vmatmul.mubr.msk.bf16.vlgmr.msra.gmra.mrb[120].mxu1 %vm263_vm2, %v4176_v2 }
 0x140   : > { %4761 = vmatpush3.bf16.msra.mxu1 %v3169_v25  ;;  %4762 = vmatprep.mubr.msk.bf16.mxu1 %vm4889_vm0, %v4888_v3 }
 0x141   : > { %4772 = vmatprep.subr.bf16.mxu1 %v4888_v3 }
 0x143   : > { %4757 = vmatmul.mubr.msk.bf16.vlgmr.msra.gmra.mrb[124].mxu0 %vm263_vm2, %v4176_v2 }
 0x144   : > { %4767 = vmatpush3.bf16.msra.mxu0 %v5211_v6  ;;  %4768 = vmatprep.mubr.msk.bf16.mxu0 %vm4889_vm0, %v4888_v3 }
 0x145   : > { %4778 = vmatprep.subr.bf16.mxu0 %v4888_v3 }
 0x147   : > { %4763 = vmatmul.mubr.msk.bf16.vlgmr.msra.gmra.mrb[124].mxu1 %vm263_vm2, %v4176_v2 }
 0x148   : > { %4773 = vmatpush3.bf16.msra.mxu1 %v5207_v9  ;;  %4774 = vmatprep.mubr.msk.bf16.mxu1 %vm4889_vm0, %v4888_v3 }
 0x149   : > { %4784 = vmatprep.subr.bf16.mxu1 %v4888_v3 }
 0x14b   : > { %4769 = vmatmul.mubr.msk.bf16.vlgmr.msra.gmra.mrb[128].mxu0 %vm263_vm2, %v4185_v36 }
 0x14c   : > { %4779 = vmatpush3.bf16.msra.mxu0 %v5217_v12  ;;  %4780 = vmatprep.mubr.msk.bf16.mxu0 %vm4889_vm0, %v4888_v3 }
 0x14d   : > { %4790 = vmatprep.subr.bf16.mxu0 %v4888_v3 }
 0x14f   : > { %4775 = vmatmul.mubr.msk.bf16.vlgmr.msra.gmra.mrb[128].mxu1 %vm263_vm2, %v4185_v36 }
 0x150   : > { %4785 = vmatpush3.bf16.msra.mxu1 %v5228_v14  ;;  %4786 = vmatprep.mubr.msk.bf16.mxu1 %vm4889_vm0, %v4888_v3 }
 0x151   : > { %4796 = vmatprep.subr.bf16.mxu1 %v4888_v3 }
 0x153   : > { %4781 = vmatmul.mubr.msk.bf16.vlgmr.msra.gmra.mrb[132].mxu0 %vm263_vm2, %v4185_v36 }
 0x154   : > { %4791 = vmatpush3.bf16.msra.mxu0 %v5236_v16  ;;  %4792 = vmatprep.mubr.msk.bf16.mxu0 %vm4889_vm0, %v4888_v3 }
 0x155   : > { %4802 = vmatprep.subr.bf16.mxu0 %v4888_v3 }
 0x157   : > { %4787 = vmatmul.mubr.msk.bf16.vlgmr.msra.gmra.mrb[132].mxu1 %vm263_vm2, %v4185_v36 }
 0x158   : > { %4797 = vmatpush3.bf16.msra.mxu1 %v5244_v19  ;;  %4798 = vmatprep.mubr.msk.bf16.mxu1 %vm4889_vm0, %v4888_v3 }
 0x159   : > { %4808 = vmatprep.subr.bf16.mxu1 %v4888_v3 }
 0x15b   : > { %4793 = vmatmul.mubr.msk.bf16.vlgmr.msra.gmra.mrb[136].mxu0 %vm263_vm2, %v4185_v36 }
 0x15c   : > { %4803 = vmatpush3.bf16.msra.mxu0 %v5252_v21  ;;  %4804 = vmatprep.mubr.msk.bf16.mxu0 %vm4889_vm0, %v4888_v3 }
 0x15d   : > { %4814 = vmatprep.subr.bf16.mxu0 %v4888_v3 }
 0x15e   : > { %v1011_v45 = vpop.f32.mrb[32].mxu0 }
 0x15f   : > { %v1388_v9 = vadd.f32 %v1011_v45, %v5453_v15  ;;  %v4482_v6 = vpop.f32.mrb[33].mxu0  ;;  %4799 = vmatmul.mubr.msk.bf16.vlgmr.msra.gmra.mrb[136].mxu1 %vm263_vm2, %v4185_v36 }
 0x160   : > { %v1014_v12 = vpop.f32.mrb[34].mxu0  ;;  %4809 = vmatpush3.bf16.msra.mxu1 %v3515_v44  ;;  %4810 = vmatprep.mubr.msk.bf16.mxu1 %vm4889_vm0, %v4888_v3 }
 0x161   : > { %v4483_v14 = vpop.f32.mrb[35].mxu0  ;;  %4820 = vmatprep.subr.bf16.mxu1 %v4888_v3 }
 0x162   : > { %v1064_v16 = vpop.f32.mrb[32].mxu1 }
 0x163   : > { %v1389_v19 = vadd.f32 %v1064_v16, %v5456_v57  ;;  %v4488_v21 = vpop.f32.mrb[33].mxu1  ;;  %4805 = vmatmul.mubr.msk.bf16.vlgmr.msra.gmra.mrb[140].mxu0 %vm263_vm2, %v4185_v36 }
 0x164   : > { %v1067_v55 = vpop.f32.mrb[34].mxu1  ;;  %4816 = vmatprep.mubr.msk.bf16.mxu0 %vm4889_vm0, %v4888_v3 }
 0x165   : > { %v4489_v56 = vpop.f32.mrb[35].mxu1 }
 0x166   : > { %v1117_v5 = vpop.f32.mrb[36].mxu0 }
 0x167   : > { %v1390_v7 = vadd.f32 %v1117_v5, %v5471_v27  ;;  %v4494_v8 = vpop.f32.mrb[37].mxu0  ;;  %4811 = vmatmul.mubr.msk.bf16.vlgmr.msra.gmra.mrb[140].mxu1 %vm263_vm2, %v4185_v36 }
 0x168   : > { %v1120_v51 = vpop.f32.mrb[38].mxu0  ;;  %4822 = vmatprep.mubr.msk.bf16.mxu1 %vm4889_vm0, %v4888_v3 }
 0x169   : > { %v4495_v4 = vpop.f32.mrb[39].mxu0 }
 0x16a   : > { %v1170_v13 = vpop.f32.mrb[36].mxu1 }
 0x16b   : > { %v1391_v15 = vadd.f32 %v1170_v13, %v5474_v61  ;;  %v4500_v57 = vpop.f32.mrb[37].mxu1 }
 0x16c   : > { %v1173_v17 = vpop.f32.mrb[38].mxu1 }
 0x16d   : > { %v4501_v20 = vpop.f32.mrb[39].mxu1 }
 0x16e   : > { %v1223_v22 = vpop.f32.mrb[40].mxu0 }
 0x16f   : > { %v1392_v23 = vadd.f32 %v1223_v22, %v5491_v63  ;;  %v4506_v58 = vpop.f32.mrb[41].mxu0 }
 0x170   : > { %v1226_v26 = vpop.f32.mrb[42].mxu0 }
 0x171   : > { %v4507_v10 = vpop.f32.mrb[43].mxu0 }
 0x172   : > { %v1276_v11 = vpop.f32.mrb[40].mxu1 }
 0x173   : > { %v1393_v27 = vadd.f32 %v1276_v11, %v5494_v38  ;;  %v4512_v28 = vpop.f32.mrb[41].mxu1 }
 0x174   : > { %v1279_v29 = vpop.f32.mrb[42].mxu1 }
 0x175   : > { %v4513_v32 = vpop.f32.mrb[43].mxu1 }
 0x176   : > { %v1329_v33 = vpop.f32.mrb[44].mxu0 }
 0x177   : > { %v1394_v62 = vadd.f32 %v1329_v33, %v5511_v49  ;;  %v4518_v34 = vpop.f32.mrb[45].mxu0 }
 0x178   : > { %v1332_v61 = vpop.f32.mrb[46].mxu0 }
 0x179   : > { %v4519_v30 = vpop.f32.mrb[47].mxu0 }
 0x17a   : > { %v1382_v31 = vpop.f32.mrb[44].mxu1 }
 0x17b   : > { %v1395_v35 = vadd.f32 %v1382_v31, %v5514_v50  ;;  %v4524_v39 = vpop.f32.mrb[45].mxu1 }
 0x17c   : > { %v1385_v63 = vpop.f32.mrb[46].mxu1 }
 0x17d   : > { %v4525_v40 = vpop.f32.mrb[47].mxu1 }
 0x17e   : > { %v1438_v41 = vpop.f32.mrb[48].mxu0 }
 0x17f   : > { %v1745_v0 = vadd.f32 %v1438_v41, %v1388_v9  ;;  %v4530_v42 = vpop.f32.mrb[49].mxu0 }
 0x180   : > { %v1441_v47 = vpop.f32.mrb[50].mxu0 }
 0x181   : > { %v4531_v38 = vpop.f32.mrb[51].mxu0 }
 0x182   : > { %v1481_v1 = vpop.f32.mrb[48].mxu1 }
 0x183   : > { %v1746_v43 = vadd.f32 %v1481_v1, %v1389_v19  ;;  %v4536_v46 = vpop.f32.mrb[49].mxu1 }
 0x184   : > { %v1484_v48 = vpop.f32.mrb[50].mxu1 }
 0x185   : > { %v4537_v52 = vpop.f32.mrb[51].mxu1 }
 0x186   : > { %v1524_v49 = vpop.f32.mrb[52].mxu0 }
 0x187   : > { %v1747_v53 = vadd.f32 %v1524_v49, %v1390_v7  ;;  %v4542_v54 = vpop.f32.mrb[53].mxu0 }
 0x188   : > { %v1527_v59 = vpop.f32.mrb[54].mxu0 }
 0x189   : > { %v4543_v18 = vpop.f32.mrb[55].mxu0 }
 0x18a   : > { %v1567_v60 = vpop.f32.mrb[52].mxu1 }
 0x18b   : > { %v1748_v50 = vadd.f32 %v1567_v60, %v1391_v15  ;;  %v4548_v2 = vpop.f32.mrb[53].mxu1 }
 0x18c   : > { %v1570_v24 = vpop.f32.mrb[54].mxu1 }
 0x18d   : > { %v4549_v25 = vpop.f32.mrb[55].mxu1 }
 0x18e   : > { %v1610_v36 = vpop.f32.mrb[56].mxu0 }
 0x18f   : > { %v1749_v37 = vadd.f32 %v1610_v36, %v1392_v23  ;;  %v4554_v44 = vpop.f32.mrb[57].mxu0 }
 0x190   : > { %v1613_v45 = vpop.f32.mrb[58].mxu0 }
 0x191   : > { %v4555_v9 = vpop.f32.mrb[59].mxu0 }
 0x192   : > { %v1653_v6 = vpop.f32.mrb[56].mxu1 }
 0x193   : > { %v1750_v12 = vadd.f32 %v1653_v6, %v1393_v27  ;;  %v4560_v14 = vpop.f32.mrb[57].mxu1 }
 0x194   : > { %v1656_v16 = vpop.f32.mrb[58].mxu1 }
 0x195   : > { %v4561_v19 = vpop.f32.mrb[59].mxu1 }
 0x196   : > { %v1696_v21 = vpop.f32.mrb[60].mxu0 }
 0x197   : > { %v1751_v55 = vadd.f32 %v1696_v21, %v1394_v62  ;;  %v4566_v56 = vpop.f32.mrb[61].mxu0  ;;  %v3596_v21 = vld [vmem:[%s5706_s4] sm:$0x7] }
 0x198   : > { %v1699_v5 = vpop.f32.mrb[62].mxu0  ;;  %3599 = vperm.xlu0 %4878, %v3596_v21  }
 0x199   : > { %v4567_v7 = vpop.f32.mrb[63].mxu0 }
 0x19a   : > { %v1739_v8 = vpop.f32.mrb[60].mxu1 }
 0x19b   : > { %v1752_v51 = vadd.f32 %v1739_v8, %v1395_v35  ;;  %v4572_v4 = vpop.f32.mrb[61].mxu1 }
 0x19c   : > { %v1742_v13 = vpop.f32.mrb[62].mxu1 }
 0x19d   : > { %v4573_v15 = vpop.f32.mrb[63].mxu1 }
 0x19e   : > { %v1795_v57 = vpop.f32.mrb[64].mxu0 }
 0x19f   : > { %v2102_v17 = vadd.f32 %v1795_v57, %v1745_v0  ;;  %v4578_v20 = vpop.f32.mrb[65].mxu0 }
 0x1a0   : > { %v1798_v22 = vpop.f32.mrb[66].mxu0 }
 0x1a1   : > { %v4579_v23 = vpop.f32.mrb[67].mxu0 }
 0x1a2   : > { %v1838_v58 = vpop.f32.mrb[64].mxu1 }
 0x1a3   : > { %v2103_v26 = vadd.f32 %v1838_v58, %v1746_v43  ;;  %v4584_v10 = vpop.f32.mrb[65].mxu1 }
 0x1a4   : > { %v1841_v11 = vpop.f32.mrb[66].mxu1 }
 0x1a5   : > { %v4585_v27 = vpop.f32.mrb[67].mxu1 }
 0x1a6   : > { %v1881_v28 = vpop.f32.mrb[68].mxu0 }
 0x1a7   : > { %v2104_v29 = vadd.f32 %v1881_v28, %v1747_v53  ;;  %v4590_v32 = vpop.f32.mrb[69].mxu0 }
 0x1a8   : > { %v1884_v33 = vpop.f32.mrb[70].mxu0 }
 0x1a9   : > { %v4591_v62 = vpop.f32.mrb[71].mxu0 }
 0x1aa   : > { %v1924_v34 = vpop.f32.mrb[68].mxu1 }
 0x1ab   : > { %v2105_v61 = vadd.f32 %v1924_v34, %v1748_v50  ;;  %v4596_v30 = vpop.f32.mrb[69].mxu1 }
 0x1ac   : > { %v1927_v31 = vpop.f32.mrb[70].mxu1 }
 0x1ad   : > { %v4597_v35 = vpop.f32.mrb[71].mxu1 }
 0x1ae   : > { %v1967_v39 = vpop.f32.mrb[72].mxu0 }
 0x1af   : > { %v2106_v63 = vadd.f32 %v1967_v39, %v1749_v37  ;;  %v4602_v40 = vpop.f32.mrb[73].mxu0 }
 0x1b0   : > { %v1970_v41 = vpop.f32.mrb[74].mxu0 }
 0x1b1   : > { %v4603_v0 = vpop.f32.mrb[75].mxu0 }
 0x1b2   : > { %v2010_v42 = vpop.f32.mrb[72].mxu1 }
 0x1b3   : > { %v2107_v47 = vadd.f32 %v2010_v42, %v1750_v12  ;;  %v4608_v38 = vpop.f32.mrb[73].mxu1 }
 0x1b4   : > { %v2013_v1 = vpop.f32.mrb[74].mxu1 }
 0x1b5   : > { %v4609_v43 = vpop.f32.mrb[75].mxu1 }
 0x1b6   : > { %v2053_v46 = vpop.f32.mrb[76].mxu0 }
 0x1b7   : > { %v2108_v48 = vadd.f32 %v2053_v46, %v1751_v55  ;;  %v4614_v52 = vpop.f32.mrb[77].mxu0 }
 0x1b8   : > { %v2056_v49 = vpop.f32.mrb[78].mxu0 }
 0x1b9   : > { %v4615_v53 = vpop.f32.mrb[79].mxu0 }
 0x1ba   : > { %v2096_v54 = vpop.f32.mrb[76].mxu1 }
 0x1bb   : > { %v2109_v59 = vadd.f32 %v2096_v54, %v1752_v51  ;;  %v4620_v18 = vpop.f32.mrb[77].mxu1 }
 0x1bc   : > { %v2099_v60 = vpop.f32.mrb[78].mxu1 }
 0x1bd   : > { %v4621_v50 = vpop.f32.mrb[79].mxu1 }
 0x1be   : > { %v2162_v2 = vpop.f32.mrb[80].mxu0 }
 0x1bf   : > { %v2539_v24 = vadd.f32 %v2162_v2, %v2102_v17  ;;  %v4626_v25 = vpop.f32.mrb[81].mxu0 }
 0x1c0   : > { %v2165_v36 = vpop.f32.mrb[82].mxu0 }
 0x1c1   : > { %v4627_v37 = vpop.f32.mrb[83].mxu0 }
 0x1c2   : > { %v2215_v44 = vpop.f32.mrb[80].mxu1 }
 0x1c3   : > { %v2540_v45 = vadd.f32 %v2215_v44, %v2103_v26  ;;  %v4632_v9 = vpop.f32.mrb[81].mxu1 }
 0x1c4   : > { %v2218_v6 = vpop.f32.mrb[82].mxu1 }
 0x1c5   : > { %v4633_v12 = vpop.f32.mrb[83].mxu1 }
 0x1c6   : > { %v2268_v14 = vpop.f32.mrb[84].mxu0 }
 0x1c7   : > { %v2541_v16 = vadd.f32 %v2268_v14, %v2104_v29  ;;  %v4638_v19 = vpop.f32.mrb[85].mxu0 }
 0x1c8   : > { %v2271_v55 = vpop.f32.mrb[86].mxu0 }
 0x1c9   : > { %v4639_v56 = vpop.f32.mrb[87].mxu0 }
 0x1ca   : > { %v2321_v5 = vpop.f32.mrb[84].mxu1 }
 0x1cb   : > { %v2542_v7 = vadd.f32 %v2321_v5, %v2105_v61  ;;  %v4644_v8 = vpop.f32.mrb[85].mxu1 }
 0x1cc   : > { %v2324_v51 = vpop.f32.mrb[86].mxu1 }
 0x1cd   : > { %v4645_v4 = vpop.f32.mrb[87].mxu1 }
 0x1ce   : > { %v2374_v13 = vpop.f32.mrb[88].mxu0 }
 0x1cf   : > { %v2543_v15 = vadd.f32 %v2374_v13, %v2106_v63  ;;  %v4650_v57 = vpop.f32.mrb[89].mxu0 }
 0x1d0   : > { %v2377_v17 = vpop.f32.mrb[90].mxu0 }
 0x1d1   : > { %v4651_v20 = vpop.f32.mrb[91].mxu0 }
 0x1d2   : > { %v2427_v22 = vpop.f32.mrb[88].mxu1 }
 0x1d3   : > { %v2544_v23 = vadd.f32 %v2427_v22, %v2107_v47  ;;  %v4656_v58 = vpop.f32.mrb[89].mxu1 }
 0x1d4   : > { %v2430_v26 = vpop.f32.mrb[90].mxu1 }
 0x1d5   : > { %v4657_v10 = vpop.f32.mrb[91].mxu1 }
 0x1d6   : > { %v2480_v11 = vpop.f32.mrb[92].mxu0 }
 0x1d7   : > { %v2545_v27 = vadd.f32 %v2480_v11, %v2108_v48  ;;  %v4662_v28 = vpop.f32.mrb[93].mxu0 }
 0x1d8   : > { %v2483_v29 = vpop.f32.mrb[94].mxu0 }
 0x1d9   : > { %v4663_v32 = vpop.f32.mrb[95].mxu0 }
 0x1da   : > { %v2533_v33 = vpop.f32.mrb[92].mxu1 }
 0x1db   : > { %v2546_v62 = vadd.f32 %v2533_v33, %v2109_v59  ;;  %v4668_v34 = vpop.f32.mrb[93].mxu1 }
 0x1dc   : > { %v2536_v61 = vpop.f32.mrb[94].mxu1 }
 0x1dd   : > { %v4669_v30 = vpop.f32.mrb[95].mxu1 }
 0x1de   : > { %v2586_v31 = vpop.f32.mrb[96].mxu0 }
 0x1df   : > { %v2875_v35 = vadd.f32 %v2586_v31, %v2539_v24  ;;  %v4674_v39 = vpop.f32.mrb[97].mxu0 }
 0x1e0   : > { %v2589_v63 = vpop.f32.mrb[98].mxu0 }
 0x1e1   : > { %v4675_v40 = vpop.f32.mrb[99].mxu0 }
 0x1e2   : > { %v2626_v41 = vpop.f32.mrb[96].mxu1 }
 0x1e3   : > { %v2876_v0 = vadd.f32 %v2626_v41, %v2540_v45  ;;  %v4680_v42 = vpop.f32.mrb[97].mxu1 }
 0x1e4   : > { %v2629_v47 = vpop.f32.mrb[98].mxu1 }
 0x1e5   : > { %v4681_v38 = vpop.f32.mrb[99].mxu1 }
 0x1e6   : > { %v2666_v1 = vpop.f32.mrb[100].mxu0 }
 0x1e7   : > { %v2877_v43 = vadd.f32 %v2666_v1, %v2541_v16  ;;  %v4686_v46 = vpop.f32.mrb[101].mxu0 }
 0x1e8   : > { %v2669_v48 = vpop.f32.mrb[102].mxu0 }
 0x1e9   : > { %v4687_v52 = vpop.f32.mrb[103].mxu0 }
 0x1ea   : > { %v2706_v49 = vpop.f32.mrb[100].mxu1 }
 0x1eb   : > { %v2878_v53 = vadd.f32 %v2706_v49, %v2542_v7  ;;  %v4692_v54 = vpop.f32.mrb[101].mxu1 }
 0x1ec   : > { %v2709_v59 = vpop.f32.mrb[102].mxu1 }
 0x1ed   : > { %v4693_v18 = vpop.f32.mrb[103].mxu1  ;;  %v5624_v59 = vpop.permute.xlu1 %3568 }
 0x1ee   : > { %v2746_v60 = vpop.f32.mrb[104].mxu0 }
 0x1ef   : > { %v2879_v50 = vadd.f32 %v2746_v60, %v2543_v15  ;;  %v4698_v2 = vpop.f32.mrb[105].mxu0 }
 0x1f0   : > { %v2749_v24 = vpop.f32.mrb[106].mxu0 }
 0x1f1   : > { %v4699_v25 = vpop.f32.mrb[107].mxu0 }
 0x1f2   : > { %v2786_v36 = vpop.f32.mrb[104].mxu1 }
 0x1f3   : > { %v2880_v37 = vadd.f32 %v2786_v36, %v2544_v23  ;;  %v4704_v44 = vpop.f32.mrb[105].mxu1 }
 0x1f4   : > { %v2789_v45 = vpop.f32.mrb[106].mxu1 }
 0x1f5   : > { %v4705_v9 = vpop.f32.mrb[107].mxu1 }
 0x1f6   : > { %v2826_v6 = vpop.f32.mrb[108].mxu0 }
 0x1f7   : > { %v2881_v12 = vadd.f32 %v2826_v6, %v2545_v27  ;;  %v4710_v14 = vpop.f32.mrb[109].mxu0 }
 0x1f8   : > { %v2829_v16 = vpop.f32.mrb[110].mxu0 }
 0x1f9   : > { %v4711_v19 = vpop.f32.mrb[111].mxu0 }
 0x1fa   : > { %v2869_v21 = vpop.f32.mrb[108].mxu1 }
 0x1fb   : > { %v2882_v55 = vadd.f32 %v2869_v21, %v2546_v62  ;;  %v4716_v56 = vpop.f32.mrb[109].mxu1 }
 0x1fc   : > { %v2872_v5 = vpop.f32.mrb[110].mxu1 }
 0x1fd   : > { %v4717_v7 = vpop.f32.mrb[111].mxu1  ;;  %v5632_v5 = vld [vmem:[%s5705_s3] sm:$0x3] }
 0x1fe   : > { %v2922_v8 = vpop.f32.mrb[112].mxu0 }
 0x1ff   : > { %v3211_v51 = vadd.f32 %v2922_v8, %v2875_v35  ;;  %v4722_v4 = vpop.f32.mrb[113].mxu0 }
 0x200   : > { %v2925_v13 = vpop.f32.mrb[114].mxu0 }
 0x201   : > { %v4723_v15 = vpop.f32.mrb[115].mxu0 }
 0x202   : > { %v2962_v57 = vpop.f32.mrb[112].mxu1 }
 0x203   : > { %v3212_v17 = vadd.f32 %v2962_v57, %v2876_v0  ;;  %v4728_v20 = vpop.f32.mrb[113].mxu1 }
 0x204   : > { %v2965_v22 = vpop.f32.mrb[114].mxu1 }
 0x205   : > { %v4729_v23 = vpop.f32.mrb[115].mxu1 }
 0x206   : > { %v3002_v58 = vpop.f32.mrb[116].mxu0 }
 0x207   : > { %v3213_v26 = vadd.f32 %v3002_v58, %v2877_v43  ;;  %v4734_v10 = vpop.f32.mrb[117].mxu0 }
 0x208   : > { %v3005_v11 = vpop.f32.mrb[118].mxu0 }
 0x209   : > { %v4735_v27 = vpop.f32.mrb[119].mxu0 }
 0x20a   : > { %v3042_v28 = vpop.f32.mrb[116].mxu1 }
 0x20b   : > { %v3214_v29 = vadd.f32 %v3042_v28, %v2878_v53  ;;  %v4740_v32 = vpop.f32.mrb[117].mxu1 }
 0x20c   : > { %v3045_v33 = vpop.f32.mrb[118].mxu1 }
 0x20d   : > { %v4741_v62 = vpop.f32.mrb[119].mxu1 }
 0x20e   : > { %v3082_v34 = vpop.f32.mrb[120].mxu0 }
 0x20f   : > { %v5616_v61 = vadd.f32 %v3082_v34, %v2879_v50  ;;  %v4746_v30 = vpop.f32.mrb[121].mxu0 }
 0x210   : > { %v3085_v31 = vpop.f32.mrb[122].mxu0 }
 0x211   : > { %v4747_v35 = vpop.f32.mrb[123].mxu0 }
 0x212   : > { %v3122_v39 = vpop.f32.mrb[120].mxu1 }
 0x213   : > { %v5618_v63 = vadd.f32 %v3122_v39, %v2880_v37  ;;  %v4752_v40 = vpop.f32.mrb[121].mxu1 }
 0x214   : > { %v3125_v41 = vpop.f32.mrb[122].mxu1 }
 0x215   : > { %v4753_v0 = vpop.f32.mrb[123].mxu1 }
 0x216   : > { %v3162_v42 = vpop.f32.mrb[124].mxu0 }
 0x217   : > { %v5620_v47 = vadd.f32 %v3162_v42, %v2881_v12  ;;  %v4758_v38 = vpop.f32.mrb[125].mxu0 }
 0x218   : > { %v3165_v1 = vpop.f32.mrb[126].mxu0 }
 0x219   : > { %v4759_v43 = vpop.f32.mrb[127].mxu0 }
 0x21a   : > { %v3205_v46 = vpop.f32.mrb[124].mxu1 }
 0x21b   : > { %v5622_v48 = vadd.f32 %v3205_v46, %v2882_v55  ;;  %v4764_v52 = vpop.f32.mrb[125].mxu1 }
 0x21c   : > { %v3208_v49 = vpop.f32.mrb[126].mxu1 }
 0x21d   : > { %v4765_v53 = vpop.f32.mrb[127].mxu1 }
 0x21e   : > { %v3258_v54 = vpop.f32.mrb[128].mxu0 }
 0x21f   : > { %v3557_v18 = vadd.f32 %v3258_v54, %v3211_v51  ;;  %v4770_v60 = vpop.f32.mrb[129].mxu0 }
 0x220   : > { %v3261_v50 = vpop.f32.mrb[130].mxu0 }
 0x221   : > { %v4771_v2 = vpop.f32.mrb[131].mxu0  ;;  %v3571_v24 = vadd.f32 %v5624_v59, %v3557_v18 }
 0x222   : > { %v3298_v25 = vpop.f32.mrb[128].mxu1 }
 0x223   : > { %v3558_v36 = vadd.f32 %v3298_v25, %v3212_v17  ;;  %v4776_v37 = vpop.f32.mrb[129].mxu1  ;;  %v3579_v44 = vmax.f32 %v3571_v24, 0.0 }
 0x224   : > { %v3301_v45 = vpop.f32.mrb[130].mxu1 }
 0x225   : > { %v3572_v9 = vadd.f32 %v5624_v59, %v3558_v36  ;;  %v4777_v6 = vpop.f32.mrb[131].mxu1  ;;  %v3588_v12 = vpack.c.bf16 %v3579_v44, %v3579_v44 }
 0x226   : > { %v3338_v14 = vpop.f32.mrb[132].mxu0 }
 0x227   : > { %v3580_v16 = vmax.f32 %v3572_v9, 0.0  ;;  %v3559_v19 = vadd.f32 %v3338_v14, %v3213_v26  ;;  %v4782_v21 = vpop.f32.mrb[133].mxu0  ;;  %v3608_v55 = vsel %vm3606_vm3, %v3588_v12, 0 }
 0x228   : > { %v3341_v56 = vpop.f32.mrb[134].mxu0  ;;  %4815 = vmatpush3.bf16.msra.mxu0 %v3608_v55 }
 0x229   : > { %v3589_v7 = vpack.c.bf16 %v3580_v16, %v3580_v16  ;;  %v3573_v8 = vadd.f32 %v5624_v59, %v3559_v19  ;;  %v4783_v51 = vpop.f32.mrb[135].mxu0  ;;  %4826 = vmatprep.subr.bf16.mxu0 %v4888_v3 }
 0x22a   : > { %v3378_v4 = vpop.f32.mrb[132].mxu1 }
 0x22b   : > { %v3581_v13 = vmax.f32 %v3573_v8, 0.0  ;;  %v3560_v15 = vadd.f32 %v3378_v4, %v3214_v29  ;;  %v4788_v57 = vpop.f32.mrb[133].mxu1  ;;  %4817 = vmatmul.mubr.msk.bf16.vlgmr.msra.gmra.mrb[144].mxu0 %vm3602_vm4, %v5632_v5  ;;  %v3651_v17 = vsel %vm3606_vm3, %v3589_v7, 0 }
 0x22c   : > { %v3381_v20 = vpop.f32.mrb[134].mxu1  ;;  %4821 = vmatpush3.bf16.msra.mxu1 %v3651_v17  ;;  %4828 = vmatprep.mubr.msk.bf16.mxu0 %vm4889_vm0, %v4888_v3 }
 0x22d   : > { %v3590_v22 = vpack.c.bf16 %v3581_v13, %v3581_v13  ;;  %v3574_v23 = vadd.f32 %v5624_v59, %v3560_v15  ;;  %v4789_v58 = vpop.f32.mrb[135].mxu1  ;;  %4832 = vmatprep.subr.bf16.mxu1 %v4888_v3 }
 0x22e   : > { %v3418_v26 = vpop.f32.mrb[136].mxu0 }
 0x22f   : > { %v3582_v10 = vmax.f32 %v3574_v23, 0.0  ;;  %v3561_v11 = vadd.f32 %v3418_v26, %v5616_v61  ;;  %v4794_v27 = vpop.f32.mrb[137].mxu0  ;;  %4823 = vmatmul.mubr.msk.bf16.vlgmr.msra.gmra.mrb[144].mxu1 %vm3602_vm4, %v5632_v5  ;;  %v3694_v28 = vsel %vm3606_vm3, %v3590_v22, 0 }
 0x230   : > { %v3421_v29 = vpop.f32.mrb[138].mxu0  ;;  %4827 = vmatpush3.bf16.msra.mxu0 %v3694_v28  ;;  %4834 = vmatprep.mubr.msk.bf16.mxu1 %vm4889_vm0, %v4888_v3 }
 0x231   : > { %v3591_v32 = vpack.c.bf16 %v3582_v10, %v3582_v10  ;;  %v3575_v33 = vadd.f32 %v5624_v59, %v3561_v11  ;;  %v4795_v62 = vpop.f32.mrb[139].mxu0  ;;  %4838 = vmatprep.subr.bf16.mxu0 %v4888_v3 }
 0x232   : > { %v3458_v34 = vpop.f32.mrb[136].mxu1 }
 0x233   : > { %v3583_v30 = vmax.f32 %v3575_v33, 0.0  ;;  %v3562_v61 = vadd.f32 %v3458_v34, %v5618_v63  ;;  %v4800_v31 = vpop.f32.mrb[137].mxu1  ;;  %4829 = vmatmul.mubr.msk.bf16.vlgmr.msra.gmra.mrb[148].mxu0 %vm3602_vm4, %v5632_v5  ;;  %v3737_v35 = vsel %vm3606_vm3, %v3591_v32, 0 }
 0x234   : > { %v3461_v39 = vpop.f32.mrb[138].mxu1  ;;  %4833 = vmatpush3.bf16.msra.mxu1 %v3737_v35  ;;  %4840 = vmatprep.mubr.msk.bf16.mxu0 %vm4889_vm0, %v4888_v3 }
 0x235   : > { %v3592_v40 = vpack.c.bf16 %v3583_v30, %v3583_v30  ;;  %v3576_v41 = vadd.f32 %v5624_v59, %v3562_v61  ;;  %v4801_v0 = vpop.f32.mrb[139].mxu1  ;;  %4844 = vmatprep.subr.bf16.mxu1 %v4888_v3 }
 0x236   : > { %v3498_v42 = vpop.f32.mrb[140].mxu0 }
 0x237   : > { %v3584_v38 = vmax.f32 %v3576_v41, 0.0  ;;  %v3563_v63 = vadd.f32 %v3498_v42, %v5620_v47  ;;  %v4806_v1 = vpop.f32.mrb[141].mxu0  ;;  %4835 = vmatmul.mubr.msk.bf16.vlgmr.msra.gmra.mrb[148].mxu1 %vm3602_vm4, %v5632_v5  ;;  %v3780_v43 = vsel %vm3606_vm3, %v3592_v40, 0 }
 0x238   : > { %v3501_v46 = vpop.f32.mrb[142].mxu0  ;;  %4839 = vmatpush3.bf16.msra.mxu0 %v3780_v43  ;;  %4846 = vmatprep.mubr.msk.bf16.mxu1 %vm4889_vm0, %v4888_v3 }
 0x239   : > { %v3593_v52 = vpack.c.bf16 %v3584_v38, %v3584_v38  ;;  %v3577_v49 = vadd.f32 %v5624_v59, %v3563_v63  ;;  %v4807_v53 = vpop.f32.mrb[143].mxu0  ;;  %4850 = vmatprep.subr.bf16.mxu0 %v4888_v3 }
 0x23a   : > { %v3551_v54 = vpop.f32.mrb[140].mxu1 }
 0x23b   : > { %v3585_v18 = vmax.f32 %v3577_v49, 0.0  ;;  %v3564_v47 = vadd.f32 %v3551_v54, %v5622_v48  ;;  %v4812_v60 = vpop.f32.mrb[141].mxu1  ;;  %4841 = vmatmul.mubr.msk.bf16.vlgmr.msra.gmra.mrb[152].mxu0 %vm3602_vm4, %v5632_v5  ;;  %v3823_v50 = vsel %vm3606_vm3, %v3593_v52, 0 }
 0x23c   : > { %v3554_v2 = vpop.f32.mrb[142].mxu1  ;;  %4845 = vmatpush3.bf16.msra.mxu1 %v3823_v50  ;;  %4852 = vmatprep.mubr.msk.bf16.mxu0 %vm4889_vm0, %v4888_v3 }
 0x23d   : > { %v3594_v24 = vpack.c.bf16 %v3585_v18, %v3585_v18  ;;  %v3578_v25 = vadd.f32 %v5624_v59, %v3564_v47  ;;  %v4813_v36 = vpop.f32.mrb[143].mxu1  ;;  %4856 = vmatprep.subr.bf16.mxu1 %v4888_v3  ;;  %v5685_v59 = vpop.permute.xlu0 %3599 }
 0x23f   : > { %v3586_v37 = vmax.f32 %v3578_v25, 0.0  ;;  %4847 = vmatmul.mubr.msk.bf16.vlgmr.msra.gmra.mrb[152].mxu1 %vm3602_vm4, %v5632_v5  ;;  %v3866_v48 = vsel %vm3606_vm3, %v3594_v24, 0 }
 0x240   : > { %4851 = vmatpush3.bf16.msra.mxu0 %v3866_v48  ;;  %4858 = vmatprep.mubr.msk.bf16.mxu1 %vm4889_vm0, %v4888_v3 }
 0x241   : > { %v3595_v44 = vpack.c.bf16 %v3586_v37, %v3586_v37 }
 0x243   : > { %4853 = vmatmul.mubr.msk.bf16.vlgmr.msra.gmra.mrb[156].mxu0 %vm3602_vm4, %v5632_v5  ;;  %v3909_v45 = vsel %vm3606_vm3, %v3595_v44, 0 }
 0x244   : > { %4857 = vmatpush3.bf16.msra.mxu1 %v3909_v45 }
 0x247   : > { %4859 = vmatmul.mubr.msk.bf16.vlgmr.msra.gmra.mrb[156].mxu1 %vm3602_vm4, %v5632_v5 }
 0x2fe   : > { %v3644_v9 = vpop.f32.mrb[144].mxu0 }
 0x2ff   : > { %v4818_v6 = vpop.f32.mrb[145].mxu0  ;;  %v3645_v12 = vadd.f32 %v3644_v9, %v5685_v59 }
 0x300   : > { %v3647_v14 = vpop.f32.mrb[146].mxu0 }
 0x301   : > { %v4214_v16 = vpack.c.bf16 %v3645_v12, %v3645_v12  ;;  %v4819_v19 = vpop.f32.mrb[147].mxu0 }
 0x302   : > { %v3687_v3 = vpop.f32.mrb[144].mxu1 }
 0x303   : > { %v3688_v21 = vadd.f32 %v3687_v3, %v5685_v59  ;;  %v3983_v55 = vunpack.c.l.b16 %v4214_v16  ;;  %v4824_v56 = vpop.f32.mrb[145].mxu1 }
 0x304   : > { %v3690_v7 = vpop.f32.mrb[146].mxu1 }
 0x305   : > { %v4215_v8 = vpack.c.bf16 %v3688_v21, %v3688_v21  ;;  %v4016_v51 = vrot.slane %v3983_v55, 1  ;;  %v4825_v4 = vpop.f32.mrb[147].mxu1  ;;  %v4034_v57 = vrot.slane %v3983_v55, 2 }
 0x306   : > { %v3730_v13 = vpop.f32.mrb[148].mxu0 }
 0x307   : > { %v3984_v5 = vunpack.c.l.b16 %v4215_v8  ;;  %v3731_v15 = vadd.f32 %v3730_v13, %v5685_v59  ;;  %v4830_v17 = vpop.f32.mrb[149].mxu0 }
 0x308   : > { %v3733_v20 = vpop.f32.mrb[150].mxu0 }
 0x309   : > { %v4216_v22 = vpack.c.bf16 %v3731_v15, %v3731_v15  ;;  %v3991_v23 = vrot.slane %v3984_v5, 7  ;;  %v4017_v58 = vsel %vm3992_vm5, %v3984_v5, %v4016_v51  ;;  %v4035_v26 = vrot.slane %v3984_v5, 1  ;;  %v4831_v10 = vpop.f32.mrb[151].mxu0 }
 0x30a   : > { %v3773_v11 = vpop.f32.mrb[148].mxu1 }
 0x30b   : > { %v3985_v27 = vunpack.c.l.b16 %v4216_v22  ;;  %v3993_v28 = vsel %vm3992_vm5, %v3991_v23, %v3983_v55  ;;  %v4036_v29 = vsel %vm3992_vm5, %v4035_v26, %v4034_v57  ;;  %v3774_v32 = vadd.f32 %v3773_v11, %v5685_v59  ;;  %v4836_v33 = vpop.f32.mrb[149].mxu1 }
 0x30c   : > { %v3776_v62 = vpop.f32.mrb[150].mxu1 }
 0x30d   : > { %v3994_v34 = vrot.slane %v3985_v27, 6  ;;  %v4018_v30 = vrot.slane %v3985_v27, 7  ;;  %v4037_v61 = vsel %vm3995_vm6, %v3985_v27, %v4036_v29  ;;  %v4217_v31 = vpack.c.bf16 %v3774_v32, %v3774_v32  ;;  %v4837_v35 = vpop.f32.mrb[151].mxu1 }
 0x30e   : > { %v3816_v39 = vpop.f32.mrb[152].mxu0 }
 0x30f   : > { %v3996_v40 = vsel %vm3995_vm6, %v3994_v34, %v3993_v28  ;;  %v4019_v41 = vsel %vm3995_vm6, %v4018_v30, %v4017_v58  ;;  %v3986_v0 = vunpack.c.l.b16 %v4217_v31  ;;  %v3817_v42 = vadd.f32 %v3816_v39, %v5685_v59  ;;  %v4842_v38 = vpop.f32.mrb[153].mxu0 }
 0x310   : > { %v3819_v63 = vpop.f32.mrb[154].mxu0 }
 0x311   : > { %v3997_v1 = vrot.slane %v3986_v0, 5  ;;  %v4020_v43 = vrot.slane %v3986_v0, 6  ;;  %v4038_v46 = vrot.slane %v3986_v0, 7  ;;  %v4218_v52 = vpack.c.bf16 %v3817_v42, %v3817_v42  ;;  %v4843_v49 = vpop.f32.mrb[155].mxu0 }
 0x312   : > { %v3859_v53 = vpop.f32.mrb[152].mxu1 }
 0x313   : > { %v3999_v54 = vsel %vm3998_vm7, %v3997_v1, %v3996_v40  ;;  %v4021_v18 = vsel %vm3998_vm7, %v4020_v43, %v4019_v41  ;;  %v4039_v47 = vsel %vm3998_vm7, %v4038_v46, %v4037_v61  ;;  %v3987_v60 = vunpack.c.l.b16 %v4218_v52  ;;  %v4848_v50 = vpop.f32.mrb[153].mxu1 }
 0x314   : > { %v3860_v2 = vadd.f32 %v3859_v53, %v5685_v59  ;;  %v3862_v24 = vpop.f32.mrb[154].mxu1 }
 0x315   : > { %v4000_v25 = vrot.slane %v3987_v60, 4  ;;  %v4022_v36 = vrot.slane %v3987_v60, 5  ;;  %v4040_v37 = vrot.slane %v3987_v60, 6  ;;  %v4849_v48 = vpop.f32.mrb[155].mxu1 }
 0x316   : > { %v4219_v44 = vpack.c.bf16 %v3860_v2, %v3860_v2  ;;  %v3902_v45 = vpop.f32.mrb[156].mxu0 }
 0x317   : > { %v4002_v9 = vsel %vm4001_vm8, %v4000_v25, %v3999_v54  ;;  %v4023_v6 = vsel %vm4001_vm8, %v4022_v36, %v4021_v18  ;;  %v4041_v12 = vsel %vm4001_vm8, %v4040_v37, %v4039_v47  ;;  %v3903_v14 = vadd.f32 %v3902_v45, %v5685_v59  ;;  %v4854_v16 = vpop.f32.mrb[157].mxu0 }
 0x318   : > { %v3988_v19 = vunpack.c.l.b16 %v4219_v44  ;;  %v3905_v3 = vpop.f32.mrb[158].mxu0 }
 0x319   : > { %v4220_v21 = vpack.c.bf16 %v3903_v14, %v3903_v14  ;;  %v4855_v55 = vpop.f32.mrb[159].mxu0 }
 0x31a   : > { %v4003_v56 = vrot.slane %v3988_v19, 3  ;;  %v4024_v7 = vrot.slane %v3988_v19, 4  ;;  %v4042_v8 = vrot.slane %v3988_v19, 5  ;;  %v3945_v51 = vpop.f32.mrb[156].mxu1 }
 0x31b   : > { %v3989_v4 = vunpack.c.l.b16 %v4220_v21  ;;  %v3946_v13 = vadd.f32 %v3945_v51, %v5685_v59  ;;  %v4860_v5 = vpop.f32.mrb[157].mxu1 }
 0x31c   : > { %v4005_v15 = vsel %vm4004_vm9, %v4003_v56, %v4002_v9  ;;  %v4025_v57 = vsel %vm4004_vm9, %v4024_v7, %v4023_v6  ;;  %v4043_v17 = vsel %vm4004_vm9, %v4042_v8, %v4041_v12  ;;  %v3948_v20 = vpop.f32.mrb[158].mxu1 }
 0x31d   : > { %v4006_v22 = vrot.slane %v3989_v4, 2  ;;  %v4026_v23 = vrot.slane %v3989_v4, 3  ;;  %v4044_v58 = vrot.slane %v3989_v4, 4  ;;  %v4221_v26 = vpack.c.bf16 %v3946_v13, %v3946_v13  ;;  %v4861_v10 = vpop.f32.mrb[159].mxu1 }
 0x31f   : > { %v4008_v11 = vsel %vm4007_vm10, %v4006_v22, %v4005_v15  ;;  %v4027_v27 = vsel %vm4007_vm10, %v4026_v23, %v4025_v57  ;;  %v4045_v28 = vsel %vm4007_vm10, %v4044_v58, %v4043_v17  ;;  %v3990_v29 = vunpack.c.l.b16 %v4221_v26 }
 0x321   : > { %v4009_v32 = vrot.slane %v3990_v29, 1  ;;  %v4028_v33 = vrot.slane %v3990_v29, 2  ;;  %v4046_v59 = vrot.slane %v3990_v29, 3 }
 0x323   : > { %v4011_v62 = vsel %vm4010_vm11, %v4009_v32, %v4008_v11  ;;  %v4029_v34 = vsel %vm4010_vm11, %v4028_v33, %v4027_v27  ;;  %v4047_v30 = vsel %vm4010_vm11, %v4046_v59, %v4045_v28 }
 0x324   : > { %v4012_v61 = vpack.c.b16 %v4011_v62, %v4011_v62  ;;  %v4030_v31 = vpack.c.b16 %v4029_v34, %v4029_v34  ;;  %v4048_v35 = vpack.c.b16 %v4047_v30, %v4047_v30 }
 0x326   : > { %4015 = vst.msk [vmem:[%s224_s29] sm:$0xf] %vm4014_vm12, %v4012_v61  ;;  %4210 = vst.msk [vmem:[%s224_s29 + $0x4] sm:$0xf] %vm4014_vm12, %v4030_v31 }
 0x327   : > { %4211 = vst.msk [vmem:[%s224_s29 + $0x8] sm:$0xf] %vm4014_vm12, %v4048_v35 }
 0x328 PF: > { %s15_s18 = sadd.s32 1, %s4885_s18  }
 0x329   : > { %p12_p4 = scmp.ge.s32.totalorder %s15_s18, 4  }
 0x32b   :  { %14 = sbr.rel (!%p12_p4) target bundleno = 1 (0x1), region = 80 }

</bundles_post_ra>
